<compile_context>
chip_gen: v7x
topology: tpu7x:2x2x1
jax: 0.10.0
libtpu: 0.0.40
codegen_flags: <defaults>
</compile_context>

<pallas_src>
import math

import jax
import jax.numpy as jnp
from jax import lax
from jax.experimental import pallas as pl
from jax.experimental.pallas import tpu as pltpu

# ---------------- model hyperparameters (small, consistent with module) -----
B = 2          # batch
S = 8          # decoder seq len
S_ENC = 8      # encoder seq len
D = 32         # d_model
H = 4          # heads_num
KH = D // H    # k_num per head
D_FF = 64      # feed-forward hidden
LN_EPS = 1e-5
OUT_LANES = 128                      # lane-dense output slab width
BF = jnp.bfloat16


# ---------------- in-kernel helpers -----------------------------------------
def _split_heads(y2d, col0, bsz, t):
    """(bsz*t, ncols) f32 -> (H*bsz, t, KH); head h = lanes [col0+h*KH, ...).

    Uses static lane slices + leading-dim stack only (no minor-dim reshapes).
    Leading index ordering is (head, batch): n = h*bsz + b.
    """
    parts = []
    for h in range(H):
        c = col0 + h * KH
        parts.append(y2d[:, c:c + KH].reshape(1, bsz, t, KH))
    return jnp.concatenate(parts, axis=0).reshape(H * bsz, t, KH)


def _attention(q, k, v):
    """q: (N, Sq, KH); k, v: (N, Skv, KH); 1/sqrt(KH) already folded into q."""
    s = lax.dot_general(q.astype(BF), k.astype(BF),
                        (((2,), (2,)), ((0,), (0,))),
                        preferred_element_type=jnp.float32)       # (N, Sq, Skv)
    m = jnp.max(s, axis=-1, keepdims=True)
    e = jnp.exp(s - m)
    p = e * pl.reciprocal(jnp.sum(e, axis=-1, keepdims=True), approx=True)
    return lax.dot_general(p.astype(BF), v.astype(BF),
                           (((2,), (1,)), ((0,), (0,))),
                           preferred_element_type=jnp.float32)    # (N, Sq, KH)


def _merge_heads_proj(ctx, wo_bf, sq):
    """ctx: (H*B, sq, KH) f32, wo_bf: (D, D) bf16 -> (B*sq, D) f32.

    sum_h ctx_h @ Wo[h*KH:(h+1)*KH, :]  ==  concat(heads) @ Wo.
    """
    ctx4 = ctx.reshape(H, B, sq, KH)
    out = None
    for h in range(H):
        ctx_h = ctx4[h].reshape(B * sq, KH).astype(BF)
        part = jnp.dot(ctx_h, wo_bf[h * KH:(h + 1) * KH, :],
                       preferred_element_type=jnp.float32)
        out = part if out is None else out + part
    return out


def _add_layernorm(residual, y, gamma, beta):
    z = residual + y
    mu = jnp.mean(z, axis=-1, keepdims=True)
    var = jnp.mean((z - mu) ** 2, axis=-1, keepdims=True)
    return (z - mu) * lax.rsqrt(var + LN_EPS) * gamma + beta


# ---------------- the fused kernel -------------------------------------------
def decoder_layer_kernel(x_ref, enc_ref,
                         wqkv1_ref, wo1_ref,
                         wq2_ref, wkv2_ref, wo2_ref,
                         wff1_ref, bff1_ref, wff2_ref, bff2_ref,
                         ln_g_ref, ln_b_ref,
                         out_ref):
    x2d = x_ref[...].reshape(B * S, D)              # (16, 32) f32
    enc2d = enc_ref[...].reshape(B * S_ENC, D)      # (16, 32) f32
    ln_g = ln_g_ref[...]
    ln_b = ln_b_ref[...]

    # --- masked self-attention (mask=None path) + add & norm 0 ---------------
    qkv = jnp.dot(x2d.astype(BF), wqkv1_ref[...],
                  preferred_element_type=jnp.float32)             # (16, 96)
    q1 = _split_heads(qkv, 0, B, S)
    k1 = _split_heads(qkv, D, B, S)
    v1 = _split_heads(qkv, 2 * D, B, S)
    sa = _merge_heads_proj(_attention(q1, k1, v1), wo1_ref[...], S)
    h0 = _add_layernorm(x2d, sa, ln_g[0:1, :], ln_b[0:1, :])

    # --- cross attention (encoder K/V) + add & norm 1 -------------------------
    q2f = jnp.dot(h0.astype(BF), wq2_ref[...],
                  preferred_element_type=jnp.float32)             # (16, 32)
    kv2 = jnp.dot(enc2d.astype(BF), wkv2_ref[...],
                  preferred_element_type=jnp.float32)             # (16, 64)
    q2 = _split_heads(q2f, 0, B, S)
    k2 = _split_heads(kv2, 0, B, S_ENC)
    v2 = _split_heads(kv2, D, B, S_ENC)
    ca = _merge_heads_proj(_attention(q2, k2, v2), wo2_ref[...], S)
    h1 = _add_layernorm(h0, ca, ln_g[1:2, :], ln_b[1:2, :])

    # --- feed forward (Linear -> ReLU -> Linear) + add & norm 2 ---------------
    ff = jnp.dot(h1.astype(BF), wff1_ref[...],
                 preferred_element_type=jnp.float32) + bff1_ref[...]
    ff = jnp.maximum(ff, 0.0)
    ff = jnp.dot(ff.astype(BF), wff2_ref[...],
                 preferred_element_type=jnp.float32) + bff2_ref[...]
    h2 = _add_layernorm(h1, ff, ln_g[2:3, :], ln_b[2:3, :])       # (16, 32)

    # --- lane-dense store: pad D=32 -> 128 lanes via exact identity matmul ----
    row = lax.broadcasted_iota(jnp.int32, (D, OUT_LANES), 0)
    col = lax.broadcasted_iota(jnp.int32, (D, OUT_LANES), 1)
    pad_eye = (row == col).astype(jnp.float32)                    # [I_32 | 0]
    out_ref[...] = jnp.dot(h2, pad_eye,
                           preferred_element_type=jnp.float32)    # (16, 128)


# ---------------- wrapper: packing + pallas_call ------------------------------
@jax.jit
def decoder_layer(x, encoder_kv, params):
    """x: (B, S, D), encoder_kv: (B, S_ENC, D) -> (B, S, D)."""
    (wq1, wk1, wv1, wo1, wq2, wk2, wv2, wo2,
     wff1, bff1, wff2, bff2, ln_g, ln_b) = params
    scale = 1.0 / math.sqrt(KH)                    # folded into Q weights

    # single-copy, bf16 packed weights (no batch/type duplication)
    wqkv1 = jnp.concatenate([wq1 * scale, wk1, wv1], axis=1).astype(BF)  # (D,3D)
    wkv2 = jnp.concatenate([wk2, wv2], axis=1).astype(BF)                # (D,2D)

    kernel_inputs = (
        x, encoder_kv,
        wqkv1, wo1.astype(BF),
        (wq2 * scale).astype(BF), wkv2, wo2.astype(BF),
        wff1.astype(BF), bff1, wff2.astype(BF), bff2,
        ln_g, ln_b,
    )
    vmem = pl.BlockSpec(memory_space=pltpu.MemorySpace.VMEM)
    y = pl.pallas_call(
        decoder_layer_kernel,
        out_shape=jax.ShapeDtypeStruct((B * S, OUT_LANES), jnp.float32),
        in_specs=[vmem] * len(kernel_inputs),
        out_specs=vmem,
    )(*kernel_inputs)
    return y[:, :D].reshape(B, S, D)


# ---------------- pure-JAX f32 reference (PyTorch semantics) ------------------
def _ref_forward(x, enc, p):
    (wq1, wk1, wv1, wo1, wq2, wk2, wv2, wo2,
     wff1, bff1, wff2, bff2, ln_g, ln_b) = p

    def mha(q_in, kv_in, wq, wk, wv, wo):
        bsz = q_in.shape[0]
        q = (q_in @ wq).reshape(bsz, -1, H, KH).transpose(0, 2, 1, 3)
        k = (kv_in @ wk).reshape(bsz, -1, H, KH).transpose(0, 2, 1, 3)
        v = (kv_in @ wv).reshape(bsz, -1, H, KH).transpose(0, 2, 1, 3)
        s = jnp.einsum("bhqd,bhkd->bhqk", q, k) / math.sqrt(KH)
        a = jax.nn.softmax(s, -1)
        o = jnp.einsum("bhqk,bhkd->bhqd", a, v)
        o = o.transpose(0, 2, 1, 3).reshape(bsz, -1, D)
        return o @ wo

    def ln(z, g, b_):
        mu = z.mean(-1, keepdims=True)
        var = ((z - mu) ** 2).mean(-1, keepdims=True)
        return (z - mu) / jnp.sqrt(var + LN_EPS) * g + b_

    h0 = ln(x + mha(x, x, wq1, wk1, wv1, wo1), ln_g[0], ln_b[0])
    h1 = ln(h0 + mha(h0, enc, wq2, wk2, wv2, wo2), ln_g[1], ln_b[1])
    ff = jnp.maximum(h1 @ wff1 + bff1[0], 0.0) @ wff2 + bff2[0]
    return ln(h1 + ff, ln_g[2], ln_b[2])


if __name__ == "__main__":
    key = jax.random.PRNGKey(0)
    ks = jax.random.split(key, 16)

    def init(k, shape, scale=0.1):
        return jax.random.normal(k, shape, jnp.float32) * scale

    params = (
        init(ks[0], (D, D)), init(ks[1], (D, D)),          # wq1, wk1
        init(ks[2], (D, D)), init(ks[3], (D, D)),          # wv1, wo1
        init(ks[4], (D, D)), init(ks[5], (D, D)),          # wq2, wk2
        init(ks[6], (D, D)), init(ks[7], (D, D)),          # wv2, wo2
        init(ks[8], (D, D_FF)), init(ks[9], (1, D_FF)),    # wff1, bff1
        init(ks[10], (D_FF, D)), init(ks[11], (1, D)),     # wff2, bff2
        jnp.ones((3, D), jnp.float32),                     # layernorm gamma
        jnp.zeros((3, D), jnp.float32),                    # layernorm beta
    )

    x = jax.random.normal(ks[12], (B, S, D), jnp.float32)
    encoder_kv = jax.random.normal(ks[13], (B, S_ENC, D), jnp.float32)

    out = jax.block_until_ready(decoder_layer(x, encoder_kv, params))
    ref = _ref_forward(x, encoder_kv, params)

    assert out.shape == (B, S, D)
    # tolerance accounts for bf16 MXU operands + the approximate (EUP)
    # softmax reciprocal vs. the pure-f32 reference
    assert jnp.allclose(out, ref, atol=2e-2, rtol=2e-2), float(
        jnp.max(jnp.abs(out - ref)))

    print("KERNEL_OK")
</pallas_src>

<mosaic_0001>
module attributes {stable_mosaic.version = 11 : i64} {
  func.func @decoder_layer_kernel(%arg0: memref<2x8x32xf32, #tpu.memory_space<vmem>>, %arg1: memref<2x8x32xf32, #tpu.memory_space<vmem>>, %arg2: memref<32x96xbf16, #tpu.memory_space<vmem>>, %arg3: memref<32x32xbf16, #tpu.memory_space<vmem>>, %arg4: memref<32x32xbf16, #tpu.memory_space<vmem>>, %arg5: memref<32x64xbf16, #tpu.memory_space<vmem>>, %arg6: memref<32x32xbf16, #tpu.memory_space<vmem>>, %arg7: memref<32x64xbf16, #tpu.memory_space<vmem>>, %arg8: memref<1x64xf32, #tpu.memory_space<vmem>>, %arg9: memref<64x32xbf16, #tpu.memory_space<vmem>>, %arg10: memref<1x32xf32, #tpu.memory_space<vmem>>, %arg11: memref<3x32xf32, #tpu.memory_space<vmem>>, %arg12: memref<3x32xf32, #tpu.memory_space<vmem>>, %arg13: memref<16x128xf32, #tpu.memory_space<vmem>>) attributes {dimension_semantics = [], scalar_prefetch = 0 : i64, scratch_operands = 0 : i64, tpu.core_type = #tpu.core_type<tc>} {
    %c0 = arith.constant 0 : index
    %c0_0 = arith.constant 0 : index
    %c0_1 = arith.constant 0 : index
    %0 = vector.load %arg0[%c0, %c0_0, %c0_1] : memref<2x8x32xf32, #tpu.memory_space<vmem>>, vector<2x8x32xf32>
    %1 = vector.shape_cast %0 : vector<2x8x32xf32> to vector<16x32xf32>
    %c0_2 = arith.constant 0 : index
    %c0_3 = arith.constant 0 : index
    %c0_4 = arith.constant 0 : index
    %2 = vector.load %arg1[%c0_2, %c0_3, %c0_4] : memref<2x8x32xf32, #tpu.memory_space<vmem>>, vector<2x8x32xf32>
    %3 = vector.shape_cast %2 : vector<2x8x32xf32> to vector<16x32xf32>
    %c0_5 = arith.constant 0 : index
    %c0_6 = arith.constant 0 : index
    %4 = vector.load %arg11[%c0_5, %c0_6] : memref<3x32xf32, #tpu.memory_space<vmem>>, vector<3x32xf32>
    %c0_7 = arith.constant 0 : index
    %c0_8 = arith.constant 0 : index
    %5 = vector.load %arg12[%c0_7, %c0_8] : memref<3x32xf32, #tpu.memory_space<vmem>>, vector<3x32xf32>
    %6 = arith.truncf %1 : vector<16x32xf32> to vector<16x32xbf16>
    %c0_9 = arith.constant 0 : index
    %c0_10 = arith.constant 0 : index
    %7 = vector.load %arg2[%c0_9, %c0_10] : memref<32x96xbf16, #tpu.memory_space<vmem>>, vector<32x96xbf16>
    %cst = arith.constant dense<0.000000e+00> : vector<16x96xf32>
    %8 = tpu.matmul %6, %7, %cst {dimension_numbers = #tpu.dot_dimension_numbers<[1], [0], [0], [1], [0, 0, 1, 1], [], []>} : vector<16x32xbf16>, vector<32x96xbf16>, vector<16x96xf32> -> vector<16x96xf32>
    %9 = vector.extract_strided_slice %8 {offsets = [0, 0], sizes = [16, 8], strides = [1, 1]} : vector<16x96xf32> to vector<16x8xf32>
    %10 = vector.shape_cast %9 : vector<16x8xf32> to vector<1x2x8x8xf32>
    %11 = vector.extract_strided_slice %8 {offsets = [0, 8], sizes = [16, 8], strides = [1, 1]} : vector<16x96xf32> to vector<16x8xf32>
    %12 = vector.shape_cast %11 : vector<16x8xf32> to vector<1x2x8x8xf32>
    %13 = vector.extract_strided_slice %8 {offsets = [0, 16], sizes = [16, 8], strides = [1, 1]} : vector<16x96xf32> to vector<16x8xf32>
    %14 = vector.shape_cast %13 : vector<16x8xf32> to vector<1x2x8x8xf32>
    %15 = vector.extract_strided_slice %8 {offsets = [0, 24], sizes = [16, 8], strides = [1, 1]} : vector<16x96xf32> to vector<16x8xf32>
    %16 = vector.shape_cast %15 : vector<16x8xf32> to vector<1x2x8x8xf32>
    %17 = tpu.concatenate %10, %12, %14, %16 in 0 : vector<1x2x8x8xf32>, vector<1x2x8x8xf32>, vector<1x2x8x8xf32>, vector<1x2x8x8xf32> -> vector<4x2x8x8xf32>
    %18 = vector.shape_cast %17 : vector<4x2x8x8xf32> to vector<8x8x8xf32>
    %19 = vector.extract_strided_slice %8 {offsets = [0, 32], sizes = [16, 8], strides = [1, 1]} : vector<16x96xf32> to vector<16x8xf32>
    %20 = vector.shape_cast %19 : vector<16x8xf32> to vector<1x2x8x8xf32>
    %21 = vector.extract_strided_slice %8 {offsets = [0, 40], sizes = [16, 8], strides = [1, 1]} : vector<16x96xf32> to vector<16x8xf32>
    %22 = vector.shape_cast %21 : vector<16x8xf32> to vector<1x2x8x8xf32>
    %23 = vector.extract_strided_slice %8 {offsets = [0, 48], sizes = [16, 8], strides = [1, 1]} : vector<16x96xf32> to vector<16x8xf32>
    %24 = vector.shape_cast %23 : vector<16x8xf32> to vector<1x2x8x8xf32>
    %25 = vector.extract_strided_slice %8 {offsets = [0, 56], sizes = [16, 8], strides = [1, 1]} : vector<16x96xf32> to vector<16x8xf32>
    %26 = vector.shape_cast %25 : vector<16x8xf32> to vector<1x2x8x8xf32>
    %27 = tpu.concatenate %20, %22, %24, %26 in 0 : vector<1x2x8x8xf32>, vector<1x2x8x8xf32>, vector<1x2x8x8xf32>, vector<1x2x8x8xf32> -> vector<4x2x8x8xf32>
    %28 = vector.shape_cast %27 : vector<4x2x8x8xf32> to vector<8x8x8xf32>
    %29 = vector.extract_strided_slice %8 {offsets = [0, 64], sizes = [16, 8], strides = [1, 1]} : vector<16x96xf32> to vector<16x8xf32>
    %30 = vector.shape_cast %29 : vector<16x8xf32> to vector<1x2x8x8xf32>
    %31 = vector.extract_strided_slice %8 {offsets = [0, 72], sizes = [16, 8], strides = [1, 1]} : vector<16x96xf32> to vector<16x8xf32>
    %32 = vector.shape_cast %31 : vector<16x8xf32> to vector<1x2x8x8xf32>
    %33 = vector.extract_strided_slice %8 {offsets = [0, 80], sizes = [16, 8], strides = [1, 1]} : vector<16x96xf32> to vector<16x8xf32>
    %34 = vector.shape_cast %33 : vector<16x8xf32> to vector<1x2x8x8xf32>
    %35 = vector.extract_strided_slice %8 {offsets = [0, 88], sizes = [16, 8], strides = [1, 1]} : vector<16x96xf32> to vector<16x8xf32>
    %36 = vector.shape_cast %35 : vector<16x8xf32> to vector<1x2x8x8xf32>
    %37 = tpu.concatenate %30, %32, %34, %36 in 0 : vector<1x2x8x8xf32>, vector<1x2x8x8xf32>, vector<1x2x8x8xf32>, vector<1x2x8x8xf32> -> vector<4x2x8x8xf32>
    %38 = vector.shape_cast %37 : vector<4x2x8x8xf32> to vector<8x8x8xf32>
    %39 = arith.truncf %18 : vector<8x8x8xf32> to vector<8x8x8xbf16>
    %40 = arith.truncf %28 : vector<8x8x8xf32> to vector<8x8x8xbf16>
    %cst_11 = arith.constant dense<0.000000e+00> : vector<8x8x8xf32>
    %41 = tpu.matmul %39, %40, %cst_11 {dimension_numbers = #tpu.dot_dimension_numbers<[2], [2], [1], [1], [0, 0, 0, 1, 1, 1], [0], [0]>} : vector<8x8x8xbf16>, vector<8x8x8xbf16>, vector<8x8x8xf32> -> vector<8x8x8xf32>
    %cst_12 = arith.constant dense<0xFF800000> : vector<8x8xf32>
    %42 = vector.multi_reduction <maximumf>, %41, %cst_12 [2] : vector<8x8x8xf32> to vector<8x8xf32>
    %43 = vector.shape_cast %42 : vector<8x8xf32> to vector<8x8x1xf32>
    %44 = vector.broadcast %43 : vector<8x8x1xf32> to vector<8x8x8xf32>
    %45 = arith.subf %41, %44 : vector<8x8x8xf32>
    %46 = math.exp %45 : vector<8x8x8xf32>
    %cst_13 = arith.constant dense<0.000000e+00> : vector<8x8xf32>
    %47 = vector.multi_reduction <add>, %46, %cst_13 [2] : vector<8x8x8xf32> to vector<8x8xf32>
    %48 = vector.shape_cast %47 : vector<8x8xf32> to vector<8x8x1xf32>
    %49 = tpu.reciprocal %48 {approx = true} : vector<8x8x1xf32> -> vector<8x8x1xf32>
    %50 = vector.broadcast %49 : vector<8x8x1xf32> to vector<8x8x8xf32>
    %51 = arith.mulf %46, %50 : vector<8x8x8xf32>
    %52 = arith.truncf %51 : vector<8x8x8xf32> to vector<8x8x8xbf16>
    %53 = arith.truncf %38 : vector<8x8x8xf32> to vector<8x8x8xbf16>
    %cst_14 = arith.constant dense<0.000000e+00> : vector<8x8x8xf32>
    %54 = tpu.matmul %52, %53, %cst_14 {dimension_numbers = #tpu.dot_dimension_numbers<[2], [1], [1], [2], [0, 0, 0, 1, 1, 2], [0], [0]>} : vector<8x8x8xbf16>, vector<8x8x8xbf16>, vector<8x8x8xf32> -> vector<8x8x8xf32>
    %c0_15 = arith.constant 0 : index
    %c0_16 = arith.constant 0 : index
    %55 = vector.load %arg3[%c0_15, %c0_16] : memref<32x32xbf16, #tpu.memory_space<vmem>>, vector<32x32xbf16>
    %56 = vector.shape_cast %54 : vector<8x8x8xf32> to vector<4x2x8x8xf32>
    %57 = vector.extract_strided_slice %56 {offsets = [0, 0, 0, 0], sizes = [1, 2, 8, 8], strides = [1, 1, 1, 1]} : vector<4x2x8x8xf32> to vector<1x2x8x8xf32>
    %58 = vector.shape_cast %57 : vector<1x2x8x8xf32> to vector<2x8x8xf32>
    %59 = vector.shape_cast %58 : vector<2x8x8xf32> to vector<16x8xf32>
    %60 = arith.truncf %59 : vector<16x8xf32> to vector<16x8xbf16>
    %61 = vector.extract_strided_slice %55 {offsets = [0, 0], sizes = [8, 32], strides = [1, 1]} : vector<32x32xbf16> to vector<8x32xbf16>
    %cst_17 = arith.constant dense<0.000000e+00> : vector<16x32xf32>
    %62 = tpu.matmul %60, %61, %cst_17 {dimension_numbers = #tpu.dot_dimension_numbers<[1], [0], [0], [1], [0, 0, 1, 1], [], []>} : vector<16x8xbf16>, vector<8x32xbf16>, vector<16x32xf32> -> vector<16x32xf32>
    %63 = vector.extract_strided_slice %56 {offsets = [1, 0, 0, 0], sizes = [1, 2, 8, 8], strides = [1, 1, 1, 1]} : vector<4x2x8x8xf32> to vector<1x2x8x8xf32>
    %64 = vector.shape_cast %63 : vector<1x2x8x8xf32> to vector<2x8x8xf32>
    %65 = vector.shape_cast %64 : vector<2x8x8xf32> to vector<16x8xf32>
    %66 = arith.truncf %65 : vector<16x8xf32> to vector<16x8xbf16>
    %67 = vector.extract_strided_slice %55 {offsets = [8, 0], sizes = [8, 32], strides = [1, 1]} : vector<32x32xbf16> to vector<8x32xbf16>
    %cst_18 = arith.constant dense<0.000000e+00> : vector<16x32xf32>
    %68 = tpu.matmul %66, %67, %cst_18 {dimension_numbers = #tpu.dot_dimension_numbers<[1], [0], [0], [1], [0, 0, 1, 1], [], []>} : vector<16x8xbf16>, vector<8x32xbf16>, vector<16x32xf32> -> vector<16x32xf32>
    %69 = arith.addf %62, %68 : vector<16x32xf32>
    %70 = vector.extract_strided_slice %56 {offsets = [2, 0, 0, 0], sizes = [1, 2, 8, 8], strides = [1, 1, 1, 1]} : vector<4x2x8x8xf32> to vector<1x2x8x8xf32>
    %71 = vector.shape_cast %70 : vector<1x2x8x8xf32> to vector<2x8x8xf32>
    %72 = vector.shape_cast %71 : vector<2x8x8xf32> to vector<16x8xf32>
    %73 = arith.truncf %72 : vector<16x8xf32> to vector<16x8xbf16>
    %74 = vector.extract_strided_slice %55 {offsets = [16, 0], sizes = [8, 32], strides = [1, 1]} : vector<32x32xbf16> to vector<8x32xbf16>
    %cst_19 = arith.constant dense<0.000000e+00> : vector<16x32xf32>
    %75 = tpu.matmul %73, %74, %cst_19 {dimension_numbers = #tpu.dot_dimension_numbers<[1], [0], [0], [1], [0, 0, 1, 1], [], []>} : vector<16x8xbf16>, vector<8x32xbf16>, vector<16x32xf32> -> vector<16x32xf32>
    %76 = arith.addf %69, %75 : vector<16x32xf32>
    %77 = vector.extract_strided_slice %56 {offsets = [3, 0, 0, 0], sizes = [1, 2, 8, 8], strides = [1, 1, 1, 1]} : vector<4x2x8x8xf32> to vector<1x2x8x8xf32>
    %78 = vector.shape_cast %77 : vector<1x2x8x8xf32> to vector<2x8x8xf32>
    %79 = vector.shape_cast %78 : vector<2x8x8xf32> to vector<16x8xf32>
    %80 = arith.truncf %79 : vector<16x8xf32> to vector<16x8xbf16>
    %81 = vector.extract_strided_slice %55 {offsets = [24, 0], sizes = [8, 32], strides = [1, 1]} : vector<32x32xbf16> to vector<8x32xbf16>
    %cst_20 = arith.constant dense<0.000000e+00> : vector<16x32xf32>
    %82 = tpu.matmul %80, %81, %cst_20 {dimension_numbers = #tpu.dot_dimension_numbers<[1], [0], [0], [1], [0, 0, 1, 1], [], []>} : vector<16x8xbf16>, vector<8x32xbf16>, vector<16x32xf32> -> vector<16x32xf32>
    %83 = arith.addf %76, %82 : vector<16x32xf32>
    %84 = vector.extract_strided_slice %4 {offsets = [0, 0], sizes = [1, 32], strides = [1, 1]} : vector<3x32xf32> to vector<1x32xf32>
    %85 = vector.extract_strided_slice %5 {offsets = [0, 0], sizes = [1, 32], strides = [1, 1]} : vector<3x32xf32> to vector<1x32xf32>
    %86 = arith.addf %1, %83 : vector<16x32xf32>
    %cst_21 = arith.constant dense<0.000000e+00> : vector<16xf32>
    %87 = vector.multi_reduction <add>, %86, %cst_21 [1] : vector<16x32xf32> to vector<16xf32>
    %88 = vector.shape_cast %87 : vector<16xf32> to vector<16x1xf32>
    %cst_22 = arith.constant 3.200000e+01 : f32
    %89 = vector.broadcast %cst_22 : f32 to vector<16x1xf32>
    %90 = arith.divf %88, %89 : vector<16x1xf32>
    %91 = vector.broadcast %90 : vector<16x1xf32> to vector<16x32xf32>
    %92 = arith.subf %86, %91 : vector<16x32xf32>
    %93 = arith.mulf %92, %92 : vector<16x32xf32>
    %cst_23 = arith.constant dense<0.000000e+00> : vector<16xf32>
    %94 = vector.multi_reduction <add>, %93, %cst_23 [1] : vector<16x32xf32> to vector<16xf32>
    %95 = vector.shape_cast %94 : vector<16xf32> to vector<16x1xf32>
    %cst_24 = arith.constant 3.200000e+01 : f32
    %96 = vector.broadcast %cst_24 : f32 to vector<16x1xf32>
    %97 = arith.divf %95, %96 : vector<16x1xf32>
    %98 = vector.broadcast %90 : vector<16x1xf32> to vector<16x32xf32>
    %99 = arith.subf %86, %98 : vector<16x32xf32>
    %cst_25 = arith.constant 9.99999974E-6 : f32
    %100 = vector.broadcast %cst_25 : f32 to vector<16x1xf32>
    %101 = arith.addf %97, %100 : vector<16x1xf32>
    %102 = math.rsqrt %101 : vector<16x1xf32>
    %103 = vector.broadcast %102 : vector<16x1xf32> to vector<16x32xf32>
    %104 = arith.mulf %99, %103 : vector<16x32xf32>
    %105 = vector.broadcast %84 : vector<1x32xf32> to vector<16x32xf32>
    %106 = arith.mulf %104, %105 : vector<16x32xf32>
    %107 = vector.broadcast %85 : vector<1x32xf32> to vector<16x32xf32>
    %108 = arith.addf %106, %107 : vector<16x32xf32>
    %109 = arith.truncf %108 : vector<16x32xf32> to vector<16x32xbf16>
    %c0_26 = arith.constant 0 : index
    %c0_27 = arith.constant 0 : index
    %110 = vector.load %arg4[%c0_26, %c0_27] : memref<32x32xbf16, #tpu.memory_space<vmem>>, vector<32x32xbf16>
    %cst_28 = arith.constant dense<0.000000e+00> : vector<16x32xf32>
    %111 = tpu.matmul %109, %110, %cst_28 {dimension_numbers = #tpu.dot_dimension_numbers<[1], [0], [0], [1], [0, 0, 1, 1], [], []>} : vector<16x32xbf16>, vector<32x32xbf16>, vector<16x32xf32> -> vector<16x32xf32>
    %112 = arith.truncf %3 : vector<16x32xf32> to vector<16x32xbf16>
    %c0_29 = arith.constant 0 : index
    %c0_30 = arith.constant 0 : index
    %113 = vector.load %arg5[%c0_29, %c0_30] : memref<32x64xbf16, #tpu.memory_space<vmem>>, vector<32x64xbf16>
    %cst_31 = arith.constant dense<0.000000e+00> : vector<16x64xf32>
    %114 = tpu.matmul %112, %113, %cst_31 {dimension_numbers = #tpu.dot_dimension_numbers<[1], [0], [0], [1], [0, 0, 1, 1], [], []>} : vector<16x32xbf16>, vector<32x64xbf16>, vector<16x64xf32> -> vector<16x64xf32>
    %115 = vector.extract_strided_slice %111 {offsets = [0, 0], sizes = [16, 8], strides = [1, 1]} : vector<16x32xf32> to vector<16x8xf32>
    %116 = vector.shape_cast %115 : vector<16x8xf32> to vector<1x2x8x8xf32>
    %117 = vector.extract_strided_slice %111 {offsets = [0, 8], sizes = [16, 8], strides = [1, 1]} : vector<16x32xf32> to vector<16x8xf32>
    %118 = vector.shape_cast %117 : vector<16x8xf32> to vector<1x2x8x8xf32>
    %119 = vector.extract_strided_slice %111 {offsets = [0, 16], sizes = [16, 8], strides = [1, 1]} : vector<16x32xf32> to vector<16x8xf32>
    %120 = vector.shape_cast %119 : vector<16x8xf32> to vector<1x2x8x8xf32>
    %121 = vector.extract_strided_slice %111 {offsets = [0, 24], sizes = [16, 8], strides = [1, 1]} : vector<16x32xf32> to vector<16x8xf32>
    %122 = vector.shape_cast %121 : vector<16x8xf32> to vector<1x2x8x8xf32>
    %123 = tpu.concatenate %116, %118, %120, %122 in 0 : vector<1x2x8x8xf32>, vector<1x2x8x8xf32>, vector<1x2x8x8xf32>, vector<1x2x8x8xf32> -> vector<4x2x8x8xf32>
    %124 = vector.shape_cast %123 : vector<4x2x8x8xf32> to vector<8x8x8xf32>
    %125 = vector.extract_strided_slice %114 {offsets = [0, 0], sizes = [16, 8], strides = [1, 1]} : vector<16x64xf32> to vector<16x8xf32>
    %126 = vector.shape_cast %125 : vector<16x8xf32> to vector<1x2x8x8xf32>
    %127 = vector.extract_strided_slice %114 {offsets = [0, 8], sizes = [16, 8], strides = [1, 1]} : vector<16x64xf32> to vector<16x8xf32>
    %128 = vector.shape_cast %127 : vector<16x8xf32> to vector<1x2x8x8xf32>
    %129 = vector.extract_strided_slice %114 {offsets = [0, 16], sizes = [16, 8], strides = [1, 1]} : vector<16x64xf32> to vector<16x8xf32>
    %130 = vector.shape_cast %129 : vector<16x8xf32> to vector<1x2x8x8xf32>
    %131 = vector.extract_strided_slice %114 {offsets = [0, 24], sizes = [16, 8], strides = [1, 1]} : vector<16x64xf32> to vector<16x8xf32>
    %132 = vector.shape_cast %131 : vector<16x8xf32> to vector<1x2x8x8xf32>
    %133 = tpu.concatenate %126, %128, %130, %132 in 0 : vector<1x2x8x8xf32>, vector<1x2x8x8xf32>, vector<1x2x8x8xf32>, vector<1x2x8x8xf32> -> vector<4x2x8x8xf32>
    %134 = vector.shape_cast %133 : vector<4x2x8x8xf32> to vector<8x8x8xf32>
    %135 = vector.extract_strided_slice %114 {offsets = [0, 32], sizes = [16, 8], strides = [1, 1]} : vector<16x64xf32> to vector<16x8xf32>
    %136 = vector.shape_cast %135 : vector<16x8xf32> to vector<1x2x8x8xf32>
    %137 = vector.extract_strided_slice %114 {offsets = [0, 40], sizes = [16, 8], strides = [1, 1]} : vector<16x64xf32> to vector<16x8xf32>
    %138 = vector.shape_cast %137 : vector<16x8xf32> to vector<1x2x8x8xf32>
    %139 = vector.extract_strided_slice %114 {offsets = [0, 48], sizes = [16, 8], strides = [1, 1]} : vector<16x64xf32> to vector<16x8xf32>
    %140 = vector.shape_cast %139 : vector<16x8xf32> to vector<1x2x8x8xf32>
    %141 = vector.extract_strided_slice %114 {offsets = [0, 56], sizes = [16, 8], strides = [1, 1]} : vector<16x64xf32> to vector<16x8xf32>
    %142 = vector.shape_cast %141 : vector<16x8xf32> to vector<1x2x8x8xf32>
    %143 = tpu.concatenate %136, %138, %140, %142 in 0 : vector<1x2x8x8xf32>, vector<1x2x8x8xf32>, vector<1x2x8x8xf32>, vector<1x2x8x8xf32> -> vector<4x2x8x8xf32>
    %144 = vector.shape_cast %143 : vector<4x2x8x8xf32> to vector<8x8x8xf32>
    %145 = arith.truncf %124 : vector<8x8x8xf32> to vector<8x8x8xbf16>
    %146 = arith.truncf %134 : vector<8x8x8xf32> to vector<8x8x8xbf16>
    %cst_32 = arith.constant dense<0.000000e+00> : vector<8x8x8xf32>
    %147 = tpu.matmul %145, %146, %cst_32 {dimension_numbers = #tpu.dot_dimension_numbers<[2], [2], [1], [1], [0, 0, 0, 1, 1, 1], [0], [0]>} : vector<8x8x8xbf16>, vector<8x8x8xbf16>, vector<8x8x8xf32> -> vector<8x8x8xf32>
    %cst_33 = arith.constant dense<0xFF800000> : vector<8x8xf32>
    %148 = vector.multi_reduction <maximumf>, %147, %cst_33 [2] : vector<8x8x8xf32> to vector<8x8xf32>
    %149 = vector.shape_cast %148 : vector<8x8xf32> to vector<8x8x1xf32>
    %150 = vector.broadcast %149 : vector<8x8x1xf32> to vector<8x8x8xf32>
    %151 = arith.subf %147, %150 : vector<8x8x8xf32>
    %152 = math.exp %151 : vector<8x8x8xf32>
    %cst_34 = arith.constant dense<0.000000e+00> : vector<8x8xf32>
    %153 = vector.multi_reduction <add>, %152, %cst_34 [2] : vector<8x8x8xf32> to vector<8x8xf32>
    %154 = vector.shape_cast %153 : vector<8x8xf32> to vector<8x8x1xf32>
    %155 = tpu.reciprocal %154 {approx = true} : vector<8x8x1xf32> -> vector<8x8x1xf32>
    %156 = vector.broadcast %155 : vector<8x8x1xf32> to vector<8x8x8xf32>
    %157 = arith.mulf %152, %156 : vector<8x8x8xf32>
    %158 = arith.truncf %157 : vector<8x8x8xf32> to vector<8x8x8xbf16>
    %159 = arith.truncf %144 : vector<8x8x8xf32> to vector<8x8x8xbf16>
    %cst_35 = arith.constant dense<0.000000e+00> : vector<8x8x8xf32>
    %160 = tpu.matmul %158, %159, %cst_35 {dimension_numbers = #tpu.dot_dimension_numbers<[2], [1], [1], [2], [0, 0, 0, 1, 1, 2], [0], [0]>} : vector<8x8x8xbf16>, vector<8x8x8xbf16>, vector<8x8x8xf32> -> vector<8x8x8xf32>
    %c0_36 = arith.constant 0 : index
    %c0_37 = arith.constant 0 : index
    %161 = vector.load %arg6[%c0_36, %c0_37] : memref<32x32xbf16, #tpu.memory_space<vmem>>, vector<32x32xbf16>
    %162 = vector.shape_cast %160 : vector<8x8x8xf32> to vector<4x2x8x8xf32>
    %163 = vector.extract_strided_slice %162 {offsets = [0, 0, 0, 0], sizes = [1, 2, 8, 8], strides = [1, 1, 1, 1]} : vector<4x2x8x8xf32> to vector<1x2x8x8xf32>
    %164 = vector.shape_cast %163 : vector<1x2x8x8xf32> to vector<2x8x8xf32>
    %165 = vector.shape_cast %164 : vector<2x8x8xf32> to vector<16x8xf32>
    %166 = arith.truncf %165 : vector<16x8xf32> to vector<16x8xbf16>
    %167 = vector.extract_strided_slice %161 {offsets = [0, 0], sizes = [8, 32], strides = [1, 1]} : vector<32x32xbf16> to vector<8x32xbf16>
    %cst_38 = arith.constant dense<0.000000e+00> : vector<16x32xf32>
    %168 = tpu.matmul %166, %167, %cst_38 {dimension_numbers = #tpu.dot_dimension_numbers<[1], [0], [0], [1], [0, 0, 1, 1], [], []>} : vector<16x8xbf16>, vector<8x32xbf16>, vector<16x32xf32> -> vector<16x32xf32>
    %169 = vector.extract_strided_slice %162 {offsets = [1, 0, 0, 0], sizes = [1, 2, 8, 8], strides = [1, 1, 1, 1]} : vector<4x2x8x8xf32> to vector<1x2x8x8xf32>
    %170 = vector.shape_cast %169 : vector<1x2x8x8xf32> to vector<2x8x8xf32>
    %171 = vector.shape_cast %170 : vector<2x8x8xf32> to vector<16x8xf32>
    %172 = arith.truncf %171 : vector<16x8xf32> to vector<16x8xbf16>
    %173 = vector.extract_strided_slice %161 {offsets = [8, 0], sizes = [8, 32], strides = [1, 1]} : vector<32x32xbf16> to vector<8x32xbf16>
    %cst_39 = arith.constant dense<0.000000e+00> : vector<16x32xf32>
    %174 = tpu.matmul %172, %173, %cst_39 {dimension_numbers = #tpu.dot_dimension_numbers<[1], [0], [0], [1], [0, 0, 1, 1], [], []>} : vector<16x8xbf16>, vector<8x32xbf16>, vector<16x32xf32> -> vector<16x32xf32>
    %175 = arith.addf %168, %174 : vector<16x32xf32>
    %176 = vector.extract_strided_slice %162 {offsets = [2, 0, 0, 0], sizes = [1, 2, 8, 8], strides = [1, 1, 1, 1]} : vector<4x2x8x8xf32> to vector<1x2x8x8xf32>
    %177 = vector.shape_cast %176 : vector<1x2x8x8xf32> to vector<2x8x8xf32>
    %178 = vector.shape_cast %177 : vector<2x8x8xf32> to vector<16x8xf32>
    %179 = arith.truncf %178 : vector<16x8xf32> to vector<16x8xbf16>
    %180 = vector.extract_strided_slice %161 {offsets = [16, 0], sizes = [8, 32], strides = [1, 1]} : vector<32x32xbf16> to vector<8x32xbf16>
    %cst_40 = arith.constant dense<0.000000e+00> : vector<16x32xf32>
    %181 = tpu.matmul %179, %180, %cst_40 {dimension_numbers = #tpu.dot_dimension_numbers<[1], [0], [0], [1], [0, 0, 1, 1], [], []>} : vector<16x8xbf16>, vector<8x32xbf16>, vector<16x32xf32> -> vector<16x32xf32>
    %182 = arith.addf %175, %181 : vector<16x32xf32>
    %183 = vector.extract_strided_slice %162 {offsets = [3, 0, 0, 0], sizes = [1, 2, 8, 8], strides = [1, 1, 1, 1]} : vector<4x2x8x8xf32> to vector<1x2x8x8xf32>
    %184 = vector.shape_cast %183 : vector<1x2x8x8xf32> to vector<2x8x8xf32>
    %185 = vector.shape_cast %184 : vector<2x8x8xf32> to vector<16x8xf32>
    %186 = arith.truncf %185 : vector<16x8xf32> to vector<16x8xbf16>
    %187 = vector.extract_strided_slice %161 {offsets = [24, 0], sizes = [8, 32], strides = [1, 1]} : vector<32x32xbf16> to vector<8x32xbf16>
    %cst_41 = arith.constant dense<0.000000e+00> : vector<16x32xf32>
    %188 = tpu.matmul %186, %187, %cst_41 {dimension_numbers = #tpu.dot_dimension_numbers<[1], [0], [0], [1], [0, 0, 1, 1], [], []>} : vector<16x8xbf16>, vector<8x32xbf16>, vector<16x32xf32> -> vector<16x32xf32>
    %189 = arith.addf %182, %188 : vector<16x32xf32>
    %190 = vector.extract_strided_slice %4 {offsets = [1, 0], sizes = [1, 32], strides = [1, 1]} : vector<3x32xf32> to vector<1x32xf32>
    %191 = vector.extract_strided_slice %5 {offsets = [1, 0], sizes = [1, 32], strides = [1, 1]} : vector<3x32xf32> to vector<1x32xf32>
    %192 = arith.addf %108, %189 : vector<16x32xf32>
    %cst_42 = arith.constant dense<0.000000e+00> : vector<16xf32>
    %193 = vector.multi_reduction <add>, %192, %cst_42 [1] : vector<16x32xf32> to vector<16xf32>
    %194 = vector.shape_cast %193 : vector<16xf32> to vector<16x1xf32>
    %cst_43 = arith.constant 3.200000e+01 : f32
    %195 = vector.broadcast %cst_43 : f32 to vector<16x1xf32>
    %196 = arith.divf %194, %195 : vector<16x1xf32>
    %197 = vector.broadcast %196 : vector<16x1xf32> to vector<16x32xf32>
    %198 = arith.subf %192, %197 : vector<16x32xf32>
    %199 = arith.mulf %198, %198 : vector<16x32xf32>
    %cst_44 = arith.constant dense<0.000000e+00> : vector<16xf32>
    %200 = vector.multi_reduction <add>, %199, %cst_44 [1] : vector<16x32xf32> to vector<16xf32>
    %201 = vector.shape_cast %200 : vector<16xf32> to vector<16x1xf32>
    %cst_45 = arith.constant 3.200000e+01 : f32
    %202 = vector.broadcast %cst_45 : f32 to vector<16x1xf32>
    %203 = arith.divf %201, %202 : vector<16x1xf32>
    %204 = vector.broadcast %196 : vector<16x1xf32> to vector<16x32xf32>
    %205 = arith.subf %192, %204 : vector<16x32xf32>
    %cst_46 = arith.constant 9.99999974E-6 : f32
    %206 = vector.broadcast %cst_46 : f32 to vector<16x1xf32>
    %207 = arith.addf %203, %206 : vector<16x1xf32>
    %208 = math.rsqrt %207 : vector<16x1xf32>
    %209 = vector.broadcast %208 : vector<16x1xf32> to vector<16x32xf32>
    %210 = arith.mulf %205, %209 : vector<16x32xf32>
    %211 = vector.broadcast %190 : vector<1x32xf32> to vector<16x32xf32>
    %212 = arith.mulf %210, %211 : vector<16x32xf32>
    %213 = vector.broadcast %191 : vector<1x32xf32> to vector<16x32xf32>
    %214 = arith.addf %212, %213 : vector<16x32xf32>
    %215 = arith.truncf %214 : vector<16x32xf32> to vector<16x32xbf16>
    %c0_47 = arith.constant 0 : index
    %c0_48 = arith.constant 0 : index
    %216 = vector.load %arg7[%c0_47, %c0_48] : memref<32x64xbf16, #tpu.memory_space<vmem>>, vector<32x64xbf16>
    %cst_49 = arith.constant dense<0.000000e+00> : vector<16x64xf32>
    %217 = tpu.matmul %215, %216, %cst_49 {dimension_numbers = #tpu.dot_dimension_numbers<[1], [0], [0], [1], [0, 0, 1, 1], [], []>} : vector<16x32xbf16>, vector<32x64xbf16>, vector<16x64xf32> -> vector<16x64xf32>
    %c0_50 = arith.constant 0 : index
    %c0_51 = arith.constant 0 : index
    %218 = vector.load %arg8[%c0_50, %c0_51] : memref<1x64xf32, #tpu.memory_space<vmem>>, vector<1x64xf32>
    %219 = vector.broadcast %218 : vector<1x64xf32> to vector<16x64xf32>
    %220 = arith.addf %217, %219 : vector<16x64xf32>
    %cst_52 = arith.constant 0.000000e+00 : f32
    %221 = vector.broadcast %cst_52 : f32 to vector<16x64xf32>
    %222 = arith.maximumf %220, %221 : vector<16x64xf32>
    %223 = arith.truncf %222 : vector<16x64xf32> to vector<16x64xbf16>
    %c0_53 = arith.constant 0 : index
    %c0_54 = arith.constant 0 : index
    %224 = vector.load %arg9[%c0_53, %c0_54] : memref<64x32xbf16, #tpu.memory_space<vmem>>, vector<64x32xbf16>
    %cst_55 = arith.constant dense<0.000000e+00> : vector<16x32xf32>
    %225 = tpu.matmul %223, %224, %cst_55 {dimension_numbers = #tpu.dot_dimension_numbers<[1], [0], [0], [1], [0, 0, 1, 1], [], []>} : vector<16x64xbf16>, vector<64x32xbf16>, vector<16x32xf32> -> vector<16x32xf32>
    %c0_56 = arith.constant 0 : index
    %c0_57 = arith.constant 0 : index
    %226 = vector.load %arg10[%c0_56, %c0_57] : memref<1x32xf32, #tpu.memory_space<vmem>>, vector<1x32xf32>
    %227 = vector.broadcast %226 : vector<1x32xf32> to vector<16x32xf32>
    %228 = arith.addf %225, %227 : vector<16x32xf32>
    %229 = vector.extract_strided_slice %4 {offsets = [2, 0], sizes = [1, 32], strides = [1, 1]} : vector<3x32xf32> to vector<1x32xf32>
    %230 = vector.extract_strided_slice %5 {offsets = [2, 0], sizes = [1, 32], strides = [1, 1]} : vector<3x32xf32> to vector<1x32xf32>
    %231 = arith.addf %214, %228 : vector<16x32xf32>
    %cst_58 = arith.constant dense<0.000000e+00> : vector<16xf32>
    %232 = vector.multi_reduction <add>, %231, %cst_58 [1] : vector<16x32xf32> to vector<16xf32>
    %233 = vector.shape_cast %232 : vector<16xf32> to vector<16x1xf32>
    %cst_59 = arith.constant 3.200000e+01 : f32
    %234 = vector.broadcast %cst_59 : f32 to vector<16x1xf32>
    %235 = arith.divf %233, %234 : vector<16x1xf32>
    %236 = vector.broadcast %235 : vector<16x1xf32> to vector<16x32xf32>
    %237 = arith.subf %231, %236 : vector<16x32xf32>
    %238 = arith.mulf %237, %237 : vector<16x32xf32>
    %cst_60 = arith.constant dense<0.000000e+00> : vector<16xf32>
    %239 = vector.multi_reduction <add>, %238, %cst_60 [1] : vector<16x32xf32> to vector<16xf32>
    %240 = vector.shape_cast %239 : vector<16xf32> to vector<16x1xf32>
    %cst_61 = arith.constant 3.200000e+01 : f32
    %241 = vector.broadcast %cst_61 : f32 to vector<16x1xf32>
    %242 = arith.divf %240, %241 : vector<16x1xf32>
    %243 = vector.broadcast %235 : vector<16x1xf32> to vector<16x32xf32>
    %244 = arith.subf %231, %243 : vector<16x32xf32>
    %cst_62 = arith.constant 9.99999974E-6 : f32
    %245 = vector.broadcast %cst_62 : f32 to vector<16x1xf32>
    %246 = arith.addf %242, %245 : vector<16x1xf32>
    %247 = math.rsqrt %246 : vector<16x1xf32>
    %248 = vector.broadcast %247 : vector<16x1xf32> to vector<16x32xf32>
    %249 = arith.mulf %244, %248 : vector<16x32xf32>
    %250 = vector.broadcast %229 : vector<1x32xf32> to vector<16x32xf32>
    %251 = arith.mulf %249, %250 : vector<16x32xf32>
    %252 = vector.broadcast %230 : vector<1x32xf32> to vector<16x32xf32>
    %253 = arith.addf %251, %252 : vector<16x32xf32>
    %254 = tpu.iota {dimensions = array<i32: 0>} : vector<32x128xi32>
    %255 = tpu.iota {dimensions = array<i32: 1>} : vector<32x128xi32>
    %256 = arith.cmpi eq, %254, %255 : vector<32x128xi32>
    %257 = arith.extui %256 : vector<32x128xi1> to vector<32x128xi32>
    %258 = arith.sitofp %257 : vector<32x128xi32> to vector<32x128xf32>
    %cst_63 = arith.constant dense<0.000000e+00> : vector<16x128xf32>
    %259 = tpu.matmul %253, %258, %cst_63 {dimension_numbers = #tpu.dot_dimension_numbers<[1], [0], [0], [1], [0, 0, 1, 1], [], []>} : vector<16x32xf32>, vector<32x128xf32>, vector<16x128xf32> -> vector<16x128xf32>
    %c0_64 = arith.constant 0 : index
    %c0_65 = arith.constant 0 : index
    %260 = vector.load %arg13[%c0_64, %c0_65] : memref<16x128xf32, #tpu.memory_space<vmem>>, vector<16x128xf32>
    tpu.vector_store %arg13[%c0_64, %c0_65], %259 {strides = array<i32>} : memref<16x128xf32, #tpu.memory_space<vmem>>, vector<16x128xf32>,
    return
  }
}

</mosaic_0001>

<bundles_post_ra>
// kernel: decoder_layer.1
= control target key start
LH: loop header
LB: loop body
LE: loop exit
PB: predicated region body
PF: predicated region fallthrough
CT: control target
= control target key end

     0   :  { %v3449_v0 = vmov 0.0   ;;  %vm3450_vm0 = vmmov 0   ;;  %vm68_vm1 = vcmask 261120   ;;  %s3453_s16 = smov 96   ;;  %s3454_s17 = smov 112   ;;  %vm144_vm2 = vcmask 64512   ;;  %s4081_s2 = inlined_call_operand.vmem [shape: bf16[32,96], index: 2, kind: input, shape index: {}]   ;;  %s4082_s0 = inlined_call_operand.vmem [shape: f32[2,8,32], index: 0, kind: input, shape index: {}]   ;;  %s4083_s3 = inlined_call_operand.vmem [shape: bf16[32,32], index: 3, kind: input, shape index: {}]   ;;  %s4084_s5 = inlined_call_operand.vmem [shape: bf16[32,64], index: 5, kind: input, shape index: {}]   ;;  %s4085_s1 = inlined_call_operand.vmem [shape: f32[2,8,32], index: 1, kind: input, shape index: {}]   ;;  %s4086_s4 = inlined_call_operand.vmem [shape: bf16[32,32], index: 4, kind: input, shape index: {}]   ;;  %s4087_s11 = inlined_call_operand.vmem [shape: f32[3,32], index: 11, kind: input, shape index: {}]   ;;  %s4088_s12 = inlined_call_operand.vmem [shape: f32[3,32], index: 12, kind: input, shape index: {}]   ;;  %s4089_s6 = inlined_call_operand.vmem [shape: bf16[32,32], index: 6, kind: input, shape index: {}]   ;;  %s4090_s7 = inlined_call_operand.vmem [shape: bf16[32,64], index: 7, kind: input, shape index: {}]   ;;  %s4091_s9 = inlined_call_operand.vmem [shape: bf16[64,32], index: 9, kind: input, shape index: {}]   ;;  %s4092_s8 = inlined_call_operand.vmem [shape: f32[1,64], index: 8, kind: input, shape index: {}]   ;;  %s4093_s10 = inlined_call_operand.vmem [shape: f32[1,32], index: 10, kind: input, shape index: {}]   ;;  %s4094_s13 = inlined_call_operand.vmem [shape: f32[16,128], index: 13, kind: output, shape index: {}]  }
   0x1   :  { %3003 = vmatprep.subr.bf16.mxu1 %v3449_v0  ;;  %v3359_v1 = vld [vmem:[%s4081_s2] sm:$0xff]   ;;  %3007 = vmatprep.mubr.msk.bf16.mxu1 %vm3450_vm0, %v3449_v0  ;;  %v3360_v2 = vld [vmem:[%s4081_s2 + $0x8] sm:$0xff]   ;;  %s3452_s2 = smov 120   ;;  %s3455_s18 = smov 64   ;;  %vm635_vm3 = vcmask 1043456   ;;  %vm2640_vm4 = vcmask 523264  }
   0x2   :  { %3017 = vmatprep.subr.bf16.mxu0 %v3449_v0  ;;  %3019 = vmatprep.mubr.msk.bf16.mxu0 %vm3450_vm0, %v3449_v0  ;;  %v3542_v3 = vld [vmem:[%s4082_s0] sm:$0xff]  ;;  %v3547_v4 = vld [vmem:[%s4082_s0 + $0x8] sm:$0xff]  ;;  %s3451_s0 = smov 104  }
   0x3   :  { %3004 = vmatpush3.bf16.msra.mxu1 %v3359_v1  ;;  %v51_v5 = vpack.c.bf16 %v3547_v4, %v3542_v3 }
   0x4   :  { %3005 = vmatprep.subr.bf16.mxu1 %v3449_v0 }
   0x7   :  { %3006 = vmatpush3.bf16.msra.mxu1 %v3360_v2 }
   0x8   :  { %3011 = vmatprep.subr.bf16.mxu1 %v3449_v0 }
   0xa   :  { %3008 = vmatmul.mubr.msk.bf16.vlgmr.msra.gmra.mrb[0].mxu1 %vm68_vm1, %v51_v5 }
   0xb   :  { %3013 = vmatprep.mubr.msk.bf16.mxu1 %vm3450_vm0, %v3449_v0 }
  0xdd   :  { %v106_v6 = vpop.f32.mrb[0].mxu1 }
  0xde   :  { %v3009_v7 = vpop.f32.mrb[1].mxu1  ;;  %v133_v11 = vpack.c.bf16 %v106_v6, %v106_v6 }
  0xdf   :  { %v109_v8 = vpop.f32.mrb[2].mxu1 }
  0xe0   :  { %v3010_v9 = vpop.f32.mrb[3].mxu1  ;;  %v3324_v10 = vpack.i.bf16 %v109_v8, %v106_v6  ;;  %v134_v12 = vpack.c.bf16 %v109_v8, %v109_v8 }
  0xe2   :  { %3325 = vrot.lane.b32.xlu1 %v3324_v10, %s3451_s0  ;;  %3315 = vrot.lane.b32.xlu0 %v3324_v10, %s3452_s2 }
  0xe6   :  { %142 = vrot.lane.b32.xlu1 %v133_v11, %s3453_s16  ;;  %3320 = vrot.lane.b32.xlu0 %v3324_v10, %s3454_s17 }
  0xea   :  { %192 = vrot.lane.b32.xlu0 %v134_v12, %s3453_s16 }
 0x154   :  { %v3326_v13 = vpop.permute.xlu1 %3325  ;;  %v3316_v14 = vpop.permute.xlu0 %3315 }
 0x155   :  { %v3318_v15 = vunpack.i.h.bf16 %v3316_v14  ;;  %v3317_v16 = vunpack.i.l.bf16 %v3316_v14  ;;  %v3327_v24 = vunpack.i.l.bf16 %v3326_v13  ;;  %v3328_v27 = vunpack.i.h.bf16 %v3326_v13 }
 0x157   :  { %v3561_v17 = vpack.c.bf16 %v3318_v15, %v3318_v15  ;;  %v3563_v18 = vpack.c.bf16 %v3317_v16, %v3317_v16  ;;  %v3580_v30 = vpack.c.bf16 %v3327_v24, %v3327_v24  ;;  %v3583_v31 = vpack.c.bf16 %v3328_v27, %v3328_v27 }
 0x158   :  { %v143_v19 = vpop.permute.xlu1 %142  ;;  %v3321_v20 = vpop.permute.xlu0 %3320 }
 0x159   :  { %v149_v21 = vsel %vm144_vm2, %v143_v19, 0  ;;  %v3323_v22 = vunpack.i.h.bf16 %v3321_v20  ;;  %v3322_v23 = vunpack.i.l.bf16 %v3321_v20  ;;  %241 = vrot.lane.b32.xlu1 %v3563_v18, %s3453_s16  ;;  %290 = vrot.lane.b32.xlu0 %v3561_v17, %s3453_s16 }
 0x15a   :  { %3012 = vmatpush3.bf16.xpose.msra.mxu1 %v149_v21 }
 0x15b   :  { %v3570_v25 = vpack.c.bf16 %v3323_v22, %v3323_v22  ;;  %v3572_v26 = vpack.c.bf16 %v3322_v23, %v3322_v23  ;;  %3023 = vmatprep.subr.bf16.mxu1 %v3449_v0 }
 0x15c   :  { %v193_v28 = vpop.permute.xlu0 %192 }
 0x15d   :  { %339 = vrot.lane.b32.xlu1 %v3572_v26, %s3453_s16  ;;  %388 = vrot.lane.b32.xlu0 %v3570_v25, %s3453_s16  ;;  %v198_v29 = vsel %vm144_vm2, %v193_v28, 0 }
 0x15e   :  { %3018 = vmatpush3.bf16.xpose.msra.mxu0 %v198_v29 }
 0x15f   :  { %3029 = vmatprep.subr.bf16.mxu0 %v3449_v0 }
 0x161   :  { %3014 = vmatmul.mubr.msk.bf16.vlgmr.msra.gmra.mrb[4].mxu1 %vm144_vm2, %v133_v11  ;;  %437 = vrot.lane.b32.xlu1 %v3580_v30, %s3453_s16 }
 0x162   :  { %486 = vrot.lane.b32.xlu0 %v3583_v31, %s3453_s16  ;;  %3025 = vmatprep.mubr.msk.bf16.mxu1 %vm3450_vm0, %v3449_v0 }
 0x165   :  { %679 = vrot.lane.b32.xlu1 %v134_v12, %s3455_s18  ;;  %3020 = vmatmul.mubr.msk.bf16.vlgmr.msra.gmra.mrb[0].mxu0 %vm144_vm2, %v134_v12 }
 0x166   :  { %630 = vrot.lane.b32.xlu0 %v133_v11, %s3455_s18  ;;  %3031 = vmatprep.mubr.msk.bf16.mxu0 %vm3450_vm0, %v3449_v0 }
 0x1cb   :  { %v242_v32 = vpop.permute.xlu1 %241  ;;  %v291_v33 = vpop.permute.xlu0 %290 }
 0x1cc   :  { %v247_v34 = vsel %vm144_vm2, %v242_v32, 0  ;;  %v296_v35 = vsel %vm144_vm2, %v291_v33, 0 }
 0x1cd   :  { %3024 = vmatpush3.bf16.xpose.msra.mxu1 %v247_v34  ;;  %3030 = vmatpush3.bf16.xpose.msra.mxu0 %v296_v35 }
 0x1ce   :  { %3035 = vmatprep.subr.bf16.mxu1 %v3449_v0  ;;  %3041 = vmatprep.subr.bf16.mxu0 %v3449_v0 }
 0x1cf   :  { %v340_v36 = vpop.permute.xlu1 %339  ;;  %v389_v37 = vpop.permute.xlu0 %388 }
 0x1d0   :  { %v345_v38 = vsel %vm144_vm2, %v340_v36, 0  ;;  %v394_v39 = vsel %vm144_vm2, %v389_v37, 0 }
 0x1d3   :  { %v438_v40 = vpop.permute.xlu1 %437 }
 0x1d4   :  { %3026 = vmatmul.mubr.msk.bf16.vlgmr.msra.gmra.mrb[8].mxu1 %vm144_vm2, %v3563_v18  ;;  %3032 = vmatmul.mubr.msk.bf16.vlgmr.msra.gmra.mrb[4].mxu0 %vm144_vm2, %v3561_v17  ;;  %v487_v41 = vpop.permute.xlu0 %486  ;;  %v443_v42 = vsel %vm144_vm2, %v438_v40, 0 }
 0x1d5   :  { %3036 = vmatpush3.bf16.xpose.msra.mxu1 %v345_v38  ;;  %3042 = vmatpush3.bf16.xpose.msra.mxu0 %v394_v39  ;;  %v492_v43 = vsel %vm144_vm2, %v487_v41, 0 }
 0x1d6   :  { %3037 = vmatprep.mubr.msk.bf16.mxu1 %vm3450_vm0, %v3449_v0  ;;  %3043 = vmatprep.mubr.msk.bf16.mxu0 %vm3450_vm0, %v3449_v0 }
 0x1d7   :  { %3047 = vmatprep.subr.bf16.mxu1 %v3449_v0  ;;  %3053 = vmatprep.subr.bf16.mxu0 %v3449_v0  ;;  %v680_v44 = vpop.permute.xlu1 %679 }
 0x1d8   :  { %v631_v45 = vpop.permute.xlu0 %630  ;;  %v685_v46 = vsel %vm635_vm3, %v680_v44, 0 }
 0x1d9   :  { %v637_v47 = vsel %vm635_vm3, %v631_v45, 0 }
 0x1dc   :  { %3038 = vmatmul.mubr.msk.bf16.vlgmr.msra.gmra.mrb[12].mxu1 %vm144_vm2, %v3572_v26  ;;  %3044 = vmatmul.mubr.msk.bf16.vlgmr.msra.gmra.mrb[8].mxu0 %vm144_vm2, %v3570_v25 }
 0x1dd   :  { %3048 = vmatpush3.bf16.xpose.msra.mxu1 %v443_v42  ;;  %3054 = vmatpush3.bf16.xpose.msra.mxu0 %v492_v43 }
 0x1de   :  { %3049 = vmatprep.mubr.msk.bf16.mxu1 %vm3450_vm0, %v3449_v0  ;;  %3055 = vmatprep.mubr.msk.bf16.mxu0 %vm3450_vm0, %v3449_v0 }
 0x1df   :  { %3059 = vmatprep.subr.bf16.mxu1 %v3449_v0  ;;  %3065 = vmatprep.subr.bf16.mxu0 %v3449_v0 }
 0x1e4   :  { %3050 = vmatmul.mubr.msk.bf16.vlgmr.msra.gmra.mrb[16].mxu1 %vm144_vm2, %v3580_v30  ;;  %3056 = vmatmul.mubr.msk.bf16.vlgmr.msra.gmra.mrb[12].mxu0 %vm144_vm2, %v3583_v31 }
 0x1e5   :  { %3060 = vmatpush3.bf16.msra.mxu1 %v637_v47  ;;  %3066 = vmatpush3.bf16.msra.mxu0 %v685_v46 }
 0x1e6   :  { %3061 = vmatprep.mubr.msk.bf16.mxu1 %vm3450_vm0, %v3449_v0  ;;  %3067 = vmatprep.mubr.msk.bf16.mxu0 %vm3450_vm0, %v3449_v0 }
 0x1e7   :  { %3071 = vmatprep.subr.bf16.mxu1 %v3449_v0  ;;  %3077 = vmatprep.subr.bf16.mxu0 %v3449_v0 }
 0x234   :  { %v185_v48 = vpop.f32.mrb[4].mxu1 }
 0x235   :  { %v3015_v49 = vpop.f32.mrb[5].mxu1  ;;  %v534_v50 = vsel %vm144_vm2, %v185_v48, -inf }
 0x236   :  { %535 = vmax.xlane.f32.xlu1 %v534_v50  ;;  %v188_v51 = vpop.f32.mrb[6].mxu1 }
 0x237   :  { %v3016_v52 = vpop.f32.mrb[7].mxu1 }
 0x238   :  { %v234_v53 = vpop.f32.mrb[0].mxu0 }
 0x239   :  { %v3021_v54 = vpop.f32.mrb[1].mxu0  ;;  %v537_v55 = vsel %vm144_vm2, %v234_v53, -inf }
 0x23a   :  { %538 = vmax.xlane.f32.xlu0 %v537_v55  ;;  %v237_v56 = vpop.f32.mrb[2].mxu0 }
 0x23b   :  { %v3022_v57 = vpop.f32.mrb[3].mxu0 }
 0x2a7   :  { %v283_v58 = vpop.f32.mrb[8].mxu1  ;;  %v332_v59 = vpop.f32.mrb[4].mxu0 }
 0x2a8   :  { %v3027_v60 = vpop.f32.mrb[9].mxu1  ;;  %v3033_v61 = vpop.f32.mrb[5].mxu0  ;;  %v543_v62 = vsel %vm144_vm2, %v332_v59, -inf  ;;  %v540_v63 = vsel %vm144_vm2, %v283_v58, -inf }
 0x2a9   :  { %v335_v1 = vpop.f32.mrb[6].mxu0  ;;  %544 = vmax.xlane.f32.xlu1 %v543_v62  ;;  %541 = vmax.xlane.f32.xlu0 %v540_v63  ;;  %v286_v2 = vpop.f32.mrb[10].mxu1 }
 0x2aa   :  { %v3028_v5 = vpop.f32.mrb[11].mxu1  ;;  %v3034_v6 = vpop.f32.mrb[7].mxu0 }
 0x2af   :  { %v3641_v7 = vpop.f32.mrb[12].mxu1  ;;  %v430_v8 = vpop.f32.mrb[8].mxu0 }
 0x2b0   :  { %v3039_v9 = vpop.f32.mrb[13].mxu1  ;;  %v3045_v10 = vpop.f32.mrb[9].mxu0  ;;  %v549_v11 = vsel %vm144_vm2, %v430_v8, -inf  ;;  %v546_v12 = vsel %vm144_vm2, %v3641_v7, -inf }
 0x2b1   :  { %v433_v13 = vpop.f32.mrb[10].mxu0  ;;  %550 = vmax.xlane.f32.xlu1 %v549_v11  ;;  %547 = vmax.xlane.f32.xlu0 %v546_v12  ;;  %v384_v14 = vpop.f32.mrb[14].mxu1 }
 0x2b2   :  { %v3040_v15 = vpop.f32.mrb[15].mxu1  ;;  %v3046_v16 = vpop.f32.mrb[11].mxu0 }
 0x2b7   :  { %v3646_v19 = vpop.f32.mrb[16].mxu1  ;;  %v528_v20 = vpop.f32.mrb[12].mxu0 }
 0x2b8   :  { %v3051_v21 = vpop.f32.mrb[17].mxu1  ;;  %v3057_v22 = vpop.f32.mrb[13].mxu0  ;;  %v555_v23 = vsel %vm144_vm2, %v528_v20, -inf  ;;  %v552_v24 = vsel %vm144_vm2, %v3646_v19, -inf }
 0x2b9   :  { %v531_v27 = vpop.f32.mrb[14].mxu0  ;;  %556 = vmax.xlane.f32.xlu1 %v555_v23  ;;  %553 = vmax.xlane.f32.xlu0 %v552_v24  ;;  %v482_v28 = vpop.f32.mrb[18].mxu1 }
 0x2ba   :  { %v3052_v29 = vpop.f32.mrb[19].mxu1  ;;  %v3058_v32 = vpop.f32.mrb[15].mxu0 }
 0x2c3   :  { %v536_v33 = vpop.xlane.xlu1 %535 }
 0x2c4   :  { %v558_v35 = vsub.f32 %v185_v48, %v536_v33 }
 0x2c6   :  { %v566_v37 = vmul.f32 1.442695, %v558_v35 }
 0x2c7   :  { %v539_v34 = vpop.xlane.xlu0 %538 }
 0x2c8   :  { %v559_v36 = vsub.f32 %v234_v53, %v539_v34  ;;  %3371 = vpow2.f32 %v566_v37 }
 0x2ca   :  { %727 = vrot.lane.b32.xlu1 %v3563_v18, %s3455_s18  ;;  %v568_v38 = vmul.f32 1.442695, %v559_v36 }
 0x2cc   :  { %3373 = vpow2.f32 %v568_v38 }
 0x2cf   :  { %775 = vrot.lane.b32.xlu0 %v3561_v17, %s3455_s18 }
 0x2d2   :  { %v3372_v39 = vpop.eup %3371 }
 0x2d3   :  { %v582_v42 = vsel %vm144_vm2, %v3372_v39, 0.0 }
 0x2d6   :  { %v3374_v40 = vpop.eup %3373 }
 0x2d7   :  { %v585_v41 = vsel %vm144_vm2, %v3374_v40, 0.0 }
 0x2ee   :  { %586 = vadd.xlane.f32.xlu1 %v585_v41  ;;  %583 = vadd.xlane.f32.xlu0 %v582_v42 }
 0x2ff   :  { %823 = vrot.lane.b32.xlu1 %v3572_v26, %s3455_s18 }
 0x336   :  { %v545_v17 = vpop.xlane.xlu1 %544  ;;  %v542_v18 = vpop.xlane.xlu0 %541 }
 0x337   :  { %v561_v43 = vsub.f32 %v332_v59, %v545_v17  ;;  %v560_v44 = vsub.f32 %v283_v58, %v542_v18 }
 0x339   :  { %v572_v45 = vmul.f32 1.442695, %v561_v43  ;;  %v570_v46 = vmul.f32 1.442695, %v560_v44  ;;  %v1015_v44 = vld [vmem:[%s4083_s3] sm:$0xf] }
 0x33b   :  { %3375 = vpow2.f32 %v572_v45 }
 0x33c   :  { %3377 = vpow2.f32 %v570_v46 }
 0x33e   :  { %v551_v47 = vpop.xlane.xlu1 %550  ;;  %v548_v60 = vpop.xlane.xlu0 %547 }
 0x33f   :  { %v563_v48 = vsub.f32 %v430_v8, %v551_v47  ;;  %v562_v61 = vsub.f32 %v3641_v7, %v548_v60 }
 0x341   :  { %v576_v49 = vmul.f32 1.442695, %v563_v48  ;;  %v574_v63 = vmul.f32 1.442695, %v562_v61  ;;  %v1072_v48 = vsel %vm635_vm3, %v1015_v44, 0 }
 0x343   :  { %3379 = vpow2.f32 %v576_v49 }
 0x345   :  { %v3659_v50 = vpop.eup %3375 }
 0x346   :  { %v3661_v51 = vpop.eup %3377  ;;  %v557_v52 = vpop.xlane.xlu1 %556  ;;  %v591_v26 = vsel %vm144_vm2, %v3659_v50, 0.0 }
 0x347   :  { %v565_v53 = vsub.f32 %v528_v20, %v557_v52  ;;  %592 = vadd.xlane.f32.xlu1 %v591_v26  ;;  %v588_v54 = vsel %vm144_vm2, %v3661_v51, 0.0  ;;  %v554_v62 = vpop.xlane.xlu0 %553 }
 0x348   :  { %589 = vadd.xlane.f32.xlu0 %v588_v54  ;;  %v564_v1 = vsub.f32 %v3646_v19, %v554_v62 }
 0x349   :  { %v580_v55 = vmul.f32 1.442695, %v565_v53 }
 0x34a   :  { %v578_v2 = vmul.f32 1.442695, %v564_v1  ;;  %v728_v5 = vpop.permute.xlu1 %727 }
 0x34b   :  { %3381 = vpow2.f32 %v580_v55  ;;  %v776_v6 = vpop.permute.xlu0 %775  ;;  %v733_v20 = vsel %vm635_vm3, %v728_v5, 0  ;;  %v1016_v55 = vld [vmem:[%s4083_s3 + $0x4] sm:$0xf]  ;;  %v1018_v5 = vld [vmem:[%s4083_s3 + $0xc] sm:$0xf] }
 0x34c   :  { %3383 = vpow2.f32 %v574_v63  ;;  %v781_v19 = vsel %vm635_vm3, %v776_v6, 0  ;;  %v1170_v6 = vsel %vm635_vm3, %v1018_v5, 0 }
 0x34d   :  { %v3667_v56 = vpop.eup %3379  ;;  %3385 = vpow2.f32 %v578_v2 }
 0x34e   :  { %v597_v57 = vsel %vm144_vm2, %v3667_v56, 0.0 }
 0x34f   :  { %598 = vadd.xlane.f32.xlu1 %v597_v57 }
 0x355   :  { %v3671_v58 = vpop.eup %3381 }
 0x356   :  { %v603_v59 = vsel %vm144_vm2, %v3671_v58, 0.0  ;;  %v3681_v8 = vpop.eup %3383 }
 0x357   :  { %604 = vadd.xlane.f32.xlu1 %v603_v59  ;;  %v3685_v7 = vpop.eup %3385 }
 0x35e   :  { %871 = vrot.lane.b32.xlu0 %v3570_v25, %s3455_s18  ;;  %v594_v25 = vsel %vm144_vm2, %v3681_v8, 0.0 }
 0x368   :  { %919 = vrot.lane.b32.xlu1 %v3580_v30, %s3455_s18  ;;  %v600_v30 = vsel %vm144_vm2, %v3685_v7, 0.0 }
 0x37b   :  { %v587_v9 = vpop.xlane.xlu1 %586  ;;  %v584_v10 = vpop.xlane.xlu0 %583 }
 0x37c   :  { %3387 = vrcp.f32 %v587_v9 }
 0x37d   :  { %3389 = vrcp.f32 %v584_v10  ;;  %595 = vadd.xlane.f32.xlu0 %v594_v25 }
 0x37f   :  { %v824_v21 = vpop.permute.xlu1 %823 }
 0x381   :  { %601 = vadd.xlane.f32.xlu0 %v600_v30 }
 0x386   :  { %v3388_v11 = vpop.eup %3387 }
 0x387   :  { %v3390_v12 = vpop.eup %3389  ;;  %v615_v13 = vmul.f32 %v3388_v11, %v3374_v40 }
 0x388   :  { %v614_v14 = vmul.f32 %v3390_v12, %v3372_v39 }
 0x389   :  { %v623_v15 = vpack.c.bf16 %v615_v13, %v615_v13 }
 0x38a   :  { %v622_v16 = vpack.c.bf16 %v614_v14, %v614_v14 }
 0x38b   :  { %3068 = vmatmul.mubr.msk.bf16.vlgmr.msra.gmra.mrb[16].mxu0 %vm144_vm2, %v623_v15 }
 0x38c   :  { %3062 = vmatmul.mubr.msk.bf16.vlgmr.msra.gmra.mrb[20].mxu1 %vm144_vm2, %v622_v16  ;;  %3078 = vmatpush3.bf16.msra.mxu0 %v781_v19 }
 0x38d   :  { %3072 = vmatpush3.bf16.msra.mxu1 %v733_v20  ;;  %3073 = vmatprep.mubr.msk.bf16.mxu1 %vm3450_vm0, %v3449_v0 }
 0x38e   :  { %3079 = vmatprep.mubr.msk.bf16.mxu0 %vm3450_vm0, %v3449_v0  ;;  %3083 = vmatprep.subr.bf16.mxu1 %v3449_v0 }
 0x38f   :  { %3089 = vmatprep.subr.bf16.mxu0 %v3449_v0 }
 0x397   :  { %967 = vrot.lane.b32.xlu0 %v3583_v31, %s3455_s18  ;;  %v829_v31 = vsel %vm635_vm3, %v824_v21, 0 }
 0x3d4   :  { %v593_v22 = vpop.xlane.xlu1 %592 }
 0x3d5   :  { %3391 = vrcp.f32 %v593_v22  ;;  %v590_v23 = vpop.xlane.xlu0 %589 }
 0x3d6   :  { %3393 = vrcp.f32 %v590_v23 }
 0x3d9   :  { %v872_v33 = vpop.permute.xlu0 %871 }
 0x3da   :  { %v877_v36 = vsel %vm635_vm3, %v872_v33, 0 }
 0x3dc   :  { %v599_v24 = vpop.xlane.xlu1 %598 }
 0x3dd   :  { %3395 = vrcp.f32 %v599_v24 }
 0x3df   :  { %v3392_v27 = vpop.eup %3391 }
 0x3e0   :  { %v3394_v28 = vpop.eup %3393  ;;  %v617_v29 = vmul.f32 %v3392_v27, %v3659_v50 }
 0x3e1   :  { %v616_v32 = vmul.f32 %v3394_v28, %v3661_v51 }
 0x3e2   :  { %v625_v34 = vpack.c.bf16 %v617_v29, %v617_v29 }
 0x3e3   :  { %v624_v35 = vpack.c.bf16 %v616_v32, %v616_v32 }
 0x3e4   :  { %3080 = vmatmul.mubr.msk.bf16.vlgmr.msra.gmra.mrb[20].mxu0 %vm144_vm2, %v625_v34  ;;  %v605_v40 = vpop.xlane.xlu1 %604 }
 0x3e5   :  { %3074 = vmatmul.mubr.msk.bf16.vlgmr.msra.gmra.mrb[24].mxu1 %vm144_vm2, %v624_v35  ;;  %3090 = vmatpush3.bf16.msra.mxu0 %v877_v36  ;;  %3397 = vrcp.f32 %v605_v40 }
 0x3e6   :  { %3084 = vmatpush3.bf16.msra.mxu1 %v829_v31  ;;  %3091 = vmatprep.mubr.msk.bf16.mxu0 %vm3450_vm0, %v3449_v0 }
 0x3e7   :  { %v3396_v37 = vpop.eup %3395  ;;  %3101 = vmatprep.subr.bf16.mxu0 %v3449_v0  ;;  %3085 = vmatprep.mubr.msk.bf16.mxu1 %vm3450_vm0, %v3449_v0 }
 0x3e8   :  { %v619_v38 = vmul.f32 %v3396_v37, %v3667_v56  ;;  %3095 = vmatprep.subr.bf16.mxu1 %v3449_v0  ;;  %v920_v50 = vpop.permute.xlu1 %919  ;;  %v1025_v56 = vsel %vm635_vm3, %v1016_v55, 0 }
 0x3e9   :  { %v925_v26 = vsel %vm635_vm3, %v920_v50, 0 }
 0x3ea   :  { %v627_v39 = vpack.c.bf16 %v619_v38, %v619_v38 }
 0x3ec   :  { %3092 = vmatmul.mubr.msk.bf16.vlgmr.msra.gmra.mrb[24].mxu0 %vm144_vm2, %v627_v39 }
 0x3ed   :  { %3103 = vmatprep.mubr.msk.bf16.mxu0 %vm3450_vm0, %v3449_v0 }
 0x3ef   :  { %v3398_v42 = vpop.eup %3397 }
 0x3f0   :  { %v621_v18 = vmul.f32 %v3398_v42, %v3671_v58 }
 0x3f2   :  { %v629_v47 = vpack.c.bf16 %v621_v18, %v621_v18 }
 0x40a   :  { %v596_v41 = vpop.xlane.xlu0 %595 }
 0x40b   :  { %3399 = vrcp.f32 %v596_v41 }
 0x40e   :  { %v602_v17 = vpop.xlane.xlu0 %601 }
 0x40f   :  { %3401 = vrcp.f32 %v602_v17 }
 0x412   :  { %v968_v43 = vpop.permute.xlu0 %967 }
 0x413   :  { %v973_v45 = vsel %vm635_vm3, %v968_v43, 0 }
 0x414   :  { %3102 = vmatpush3.bf16.msra.mxu0 %v973_v45 }
 0x415   :  { %v3400_v46 = vpop.eup %3399  ;;  %3113 = vmatprep.subr.bf16.mxu0 %v3449_v0 }
 0x416   :  { %v618_v49 = vmul.f32 %v3400_v46, %v3681_v8  ;;  %v1017_v8 = vld [vmem:[%s4083_s3 + $0x8] sm:$0xf] }
 0x417   :  { %3104 = vmatmul.mubr.msk.bf16.vlgmr.msra.gmra.mrb[28].mxu0 %vm144_vm2, %v629_v47  ;;  %v1120_v12 = vsel %vm635_vm3, %v1017_v8, 0 }
 0x418   :  { %v626_v51 = vpack.c.bf16 %v618_v49, %v618_v49  ;;  %3114 = vmatpush3.bf16.msra.mxu0 %v1072_v48  ;;  %3115 = vmatprep.mubr.msk.bf16.mxu0 %vm3450_vm0, %v3449_v0 }
 0x419   :  { %v3402_v52 = vpop.eup %3401  ;;  %3125 = vmatprep.subr.bf16.mxu0 %v3449_v0 }
 0x41a   :  { %3086 = vmatmul.mubr.msk.bf16.vlgmr.msra.gmra.mrb[28].mxu1 %vm144_vm2, %v626_v51  ;;  %v620_v53 = vmul.f32 %v3402_v52, %v3685_v7 }
 0x41b   :  { %3096 = vmatpush3.bf16.msra.mxu1 %v925_v26  ;;  %3097 = vmatprep.mubr.msk.bf16.mxu1 %vm3450_vm0, %v3449_v0 }
 0x41c   :  { %3107 = vmatprep.subr.bf16.mxu1 %v3449_v0  ;;  %v628_v54 = vpack.c.bf16 %v620_v53, %v620_v53 }
 0x422   :  { %3098 = vmatmul.mubr.msk.bf16.vlgmr.msra.gmra.mrb[32].mxu1 %vm144_vm2, %v628_v54 }
 0x423   :  { %3109 = vmatprep.mubr.msk.bf16.mxu1 %vm3450_vm0, %v3449_v0  ;;  %3108 = vmatpush3.bf16.msra.mxu1 %v1025_v56 }
 0x424   :  { %3119 = vmatprep.subr.bf16.mxu1 %v3449_v0 }
 0x45e   :  { %v721_v57 = vpop.f32.mrb[16].mxu0 }
 0x45f   :  { %v673_v58 = vpop.f32.mrb[20].mxu1  ;;  %v3069_v59 = vpop.f32.mrb[17].mxu0 }
 0x460   :  { %v1019_v60 = vpack.c.bf16 %v721_v57, %v673_v58  ;;  %v3063_v61 = vpop.f32.mrb[21].mxu1  ;;  %v724_v62 = vpop.f32.mrb[18].mxu0 }
 0x461   :  { %v676_v63 = vpop.f32.mrb[22].mxu1  ;;  %v3070_v1 = vpop.f32.mrb[19].mxu0 }
 0x462   :  { %v3064_v2 = vpop.f32.mrb[23].mxu1  ;;  %3116 = vmatmul.mubr.msk.bf16.vlgmr.msra.gmra.mrb[32].mxu0 %vm144_vm2, %v1019_v60 }
 0x463   :  { %3127 = vmatprep.mubr.msk.bf16.mxu0 %vm3450_vm0, %v3449_v0  ;;  %3126 = vmatpush3.bf16.msra.mxu0 %v1170_v6 }
 0x464   :  { %3139 = vmatprep.subr.bf16.mxu0 %v3449_v0 }
 0x4b7   :  { %v817_v9 = vpop.f32.mrb[20].mxu0 }
 0x4b8   :  { %v769_v10 = vpop.f32.mrb[24].mxu1  ;;  %v3081_v25 = vpop.f32.mrb[21].mxu0 }
 0x4b9   :  { %v1020_v7 = vpack.c.bf16 %v817_v9, %v769_v10  ;;  %v3075_v30 = vpop.f32.mrb[25].mxu1  ;;  %v820_v11 = vpop.f32.mrb[22].mxu0  ;;  %v3362_v25 = vld [vmem:[%s4084_s5 + $0x8] sm:$0xff]  }
 0x4ba   :  { %v772_v13 = vpop.f32.mrb[26].mxu1  ;;  %v3082_v14 = vpop.f32.mrb[23].mxu0  ;;  %v48_v30 = vld [vmem:[%s4085_s1 + $0x8] sm:$0xff] }
 0x4bb   :  { %v3076_v15 = vpop.f32.mrb[27].mxu1  ;;  %3110 = vmatmul.mubr.msk.bf16.vlgmr.msra.gmra.mrb[36].mxu1 %vm144_vm2, %v1020_v7  ;;  %v47_v7 = vld [vmem:[%s4085_s1] sm:$0xff]  ;;  %v3364_v13 = vld [vmem:[%s4086_s4 + $0x8] sm:$0xff]  }
 0x4bc   :  { %3120 = vmatpush3.bf16.msra.mxu1 %v1120_v12  ;;  %3121 = vmatprep.mubr.msk.bf16.mxu1 %vm3450_vm0, %v3449_v0  ;;  %v1317_v11 = vpack.c.bf16 %v48_v30, %v47_v7  ;;  %v3363_v12 = vld [vmem:[%s4086_s4] sm:$0xff]  }
 0x4bd   :  { %3131 = vmatprep.subr.bf16.mxu1 %v3449_v0 }
 0x4bf   :  { %v913_v16 = vpop.f32.mrb[24].mxu0 }
 0x4c0   :  { %v3093_v19 = vpop.f32.mrb[25].mxu0 }
 0x4c1   :  { %v916_v20 = vpop.f32.mrb[26].mxu0 }
 0x4c2   :  { %v3094_v21 = vpop.f32.mrb[27].mxu0 }
 0x4ea   :  { %v1009_v22 = vpop.f32.mrb[28].mxu0 }
 0x4eb   :  { %v3105_v23 = vpop.f32.mrb[29].mxu0 }
 0x4ec   :  { %v1012_v24 = vpop.f32.mrb[30].mxu0 }
 0x4ed   :  { %v865_v27 = vpop.f32.mrb[28].mxu1  ;;  %v3106_v28 = vpop.f32.mrb[31].mxu0 }
 0x4ee   :  { %v1115_v29 = vpack.c.bf16 %v913_v16, %v865_v27  ;;  %v3087_v32 = vpop.f32.mrb[29].mxu1  ;;  %v1244_v16 = vlaneseq  ;;  %v3803_v27 = vld [vmem:[%s4087_s11] sm:$0x7] }
 0x4ef   :  { %v868_v33 = vpop.f32.mrb[30].mxu1  ;;  %v3809_v32 = vld [vmem:[%s4088_s12] sm:$0x7] }
 0x4f0   :  { %v3088_v34 = vpop.f32.mrb[31].mxu1  ;;  %3122 = vmatmul.mubr.msk.bf16.vlgmr.msra.gmra.mrb[40].mxu1 %vm144_vm2, %v1115_v29  ;;  %v3797_v23 = vshrl.u32 %v1244_v16, 7 }
 0x4f1   :  { %3135 = vmatprep.mubr.msk.bf16.mxu1 %vm3450_vm0, %v3449_v0  ;;  %3132 = vmatpush3.bf16.msra.mxu1 %v3363_v12 }
 0x4f2   :  { %3133 = vmatprep.subr.bf16.mxu1 %v3449_v0  ;;  %v1246_v24 = vsub.s32 0, %v3797_v23 }
 0x4f4   :  { %v1247_v28 = vrot.slane %v3803_v27, %v1246_v24 }
 0x4f5   :  { %v961_v35 = vpop.f32.mrb[32].mxu1  ;;  %3134 = vmatpush3.bf16.msra.mxu1 %v3364_v13 }
 0x4f6   :  { %v1165_v36 = vpack.c.bf16 %v1009_v22, %v961_v35  ;;  %v3099_v31 = vpop.f32.mrb[33].mxu1  ;;  %3147 = vmatprep.subr.bf16.mxu1 %v3449_v0 }
 0x4f7   :  { %v964_v37 = vpop.f32.mrb[34].mxu1  ;;  %v1253_v31 = vrot.slane %v3809_v32, %v1246_v24 }
 0x4f8   :  { %v3100_v38 = vpop.f32.mrb[35].mxu1  ;;  %3128 = vmatmul.mubr.msk.bf16.vlgmr.msra.gmra.mrb[36].mxu0 %vm144_vm2, %v1165_v36 }
 0x4f9   :  { %3143 = vmatprep.mubr.msk.bf16.mxu0 %vm3450_vm0, %v3449_v0 }
 0x535   :  { %v1108_v39 = vpop.f32.mrb[32].mxu0 }
 0x536   :  { %v3117_v40 = vpop.f32.mrb[33].mxu0 }
 0x537   :  { %v1111_v41 = vpop.f32.mrb[34].mxu0 }
 0x538   :  { %v3118_v42 = vpop.f32.mrb[35].mxu0 }
 0x58e   :  { %v1061_v17 = vpop.f32.mrb[36].mxu1 }
 0x58f   :  { %v1109_v18 = vadd.f32 %v1108_v39, %v1061_v17  ;;  %v3111_v43 = vpop.f32.mrb[37].mxu1 }
 0x590   :  { %v1064_v44 = vpop.f32.mrb[38].mxu1 }
 0x591   :  { %v1112_v45 = vadd.f32 %v1111_v41, %v1064_v44  ;;  %v3112_v46 = vpop.f32.mrb[39].mxu1 }
 0x5c3   :  { %v1156_v47 = vpop.f32.mrb[40].mxu1 }
 0x5c4   :  { %v1163_v48 = vadd.f32 %v1156_v47, %v1109_v18  ;;  %v3123_v49 = vpop.f32.mrb[41].mxu1 }
 0x5c5   :  { %v1159_v50 = vpop.f32.mrb[42].mxu1 }
 0x5c6   :  { %v1164_v51 = vadd.f32 %v1159_v50, %v1112_v45  ;;  %v3124_v52 = vpop.f32.mrb[43].mxu1 }
 0x5cb   :  { %v1206_v26 = vpop.f32.mrb[36].mxu0 }
 0x5cc   :  { %v1213_v53 = vadd.f32 %v1206_v26, %v1163_v48  ;;  %v3129_v54 = vpop.f32.mrb[37].mxu0 }
 0x5cd   :  { %v1209_v55 = vpop.f32.mrb[38].mxu0 }
 0x5ce   :  { %v1214_v56 = vadd.f32 %v1209_v55, %v1164_v51  ;;  %v3130_v57 = vpop.f32.mrb[39].mxu0  ;;  %v1215_v58 = vadd.f32 %v1213_v53, %v3542_v3 }
 0x5d0   :  { %v1217_v59 = vsel %vm68_vm1, %v1215_v58, 0.0  ;;  %v1216_v60 = vadd.f32 %v1214_v56, %v3547_v4  ;;  %v3361_v4 = vld [vmem:[%s4084_s5] sm:$0xff]  }
 0x5d1   :  { %1218 = vadd.xlane.f32.xlu1 %v1217_v59  ;;  %3140 = vmatpush3.bf16.msra.mxu0 %v3361_v4 }
 0x5d2   :  { %v1220_v61 = vsel %vm68_vm1, %v1216_v60, 0.0  ;;  %3141 = vmatprep.subr.bf16.mxu0 %v3449_v0 }
 0x5d3   :  { %1221 = vadd.xlane.f32.xlu0 %v1220_v61 }
 0x5d5   :  { %3142 = vmatpush3.bf16.msra.mxu0 %v3362_v25 }
 0x5d6   :  { %3153 = vmatprep.subr.bf16.mxu0 %v3449_v0 }
 0x5d8   :  { %3144 = vmatmul.mubr.msk.bf16.vlgmr.msra.gmra.mrb[40].mxu0 %vm68_vm1, %v1317_v11 }
 0x5d9   :  { %3155 = vmatprep.mubr.msk.bf16.mxu0 %vm3450_vm0, %v3449_v0 }
 0x65e   :  { %v1219_v62 = vpop.xlane.xlu1 %1218 }
 0x65f   :  { %v1224_v63 = vmul.f32 0.03125, %v1219_v62 }
 0x660   :  { %v1222_v1 = vpop.xlane.xlu0 %1221 }
 0x661   :  { %v1226_v2 = vsub.f32 %v1215_v58, %v1224_v63  ;;  %v1225_v5 = vmul.f32 0.03125, %v1222_v1 }
 0x663   :  { %v1227_v6 = vsub.f32 %v1216_v60, %v1225_v5  ;;  %v1228_v8 = vmul.f32 %v1226_v2, %v1226_v2 }
 0x665   :  { %v1230_v9 = vsel %vm68_vm1, %v1228_v8, 0.0  ;;  %v1229_v10 = vmul.f32 %v1227_v6, %v1227_v6 }
 0x666   :  { %1231 = vadd.xlane.f32.xlu0 %v1230_v9 }
 0x667   :  { %v1233_v3 = vsel %vm68_vm1, %v1229_v10, 0.0 }
 0x668   :  { %1234 = vadd.xlane.f32.xlu1 %v1233_v3 }
 0x6ab   :  { %v1371_v41 = vpop.f32.mrb[40].mxu0 }
 0x6ac   :  { %v3145_v42 = vpop.f32.mrb[41].mxu0  ;;  %v1426_v17 = vpack.c.bf16 %v1371_v41, %v1371_v41 }
 0x6ad   :  { %v1374_v18 = vpop.f32.mrb[42].mxu0 }
 0x6ae   :  { %v3146_v43 = vpop.f32.mrb[43].mxu0  ;;  %v3329_v44 = vpack.i.bf16 %v1374_v18, %v1371_v41  ;;  %v1438_v45 = vsel %vm144_vm2, %v1426_v17, 0  ;;  %v1427_v46 = vpack.c.bf16 %v1374_v18, %v1374_v18 }
 0x6b0   :  { %3330 = vrot.lane.b32.xlu0 %v3329_v44, %s3452_s2  ;;  %v1484_v47 = vsel %vm144_vm2, %v1427_v46, 0 }
 0x6b1   :  { %3154 = vmatpush3.bf16.xpose.msra.mxu0 %v1484_v47 }
 0x6b2   :  { %3165 = vmatprep.subr.bf16.mxu0 %v3449_v0 }
 0x6f3   :  { %v1232_v14 = vpop.xlane.xlu0 %1231 }
 0x6f4   :  { %v1236_v15 = vmul.f32 0.03125, %v1232_v14 }
 0x6f5   :  { %v1235_v19 = vpop.xlane.xlu1 %1234 }
 0x6f6   :  { %v1238_v20 = vadd.f32 1e-05, %v1236_v15  ;;  %v1237_v21 = vmul.f32 0.03125, %v1235_v19 }
 0x6f8   :  { %3403 = vrsqrt.f32 %v1238_v20  ;;  %v1239_v22 = vadd.f32 1e-05, %v1237_v21 }
 0x6fa   :  { %3405 = vrsqrt.f32 %v1239_v22 }
 0x702   :  { %v3404_v29 = vpop.eup %3403 }
 0x703   :  { %v1242_v33 = vmul.f32 %v3404_v29, %v1226_v2 }
 0x704   :  { %v3406_v34 = vpop.eup %3405 }
 0x705   :  { %v1248_v35 = vmul.f32 %v1247_v28, %v1242_v33  ;;  %v1243_v36 = vmul.f32 %v3406_v34, %v1227_v6 }
 0x707   :  { %v1249_v37 = vmul.f32 %v1247_v28, %v1243_v36  ;;  %v3812_v38 = vadd.f32 %v1253_v31, %v1248_v35 }
 0x709   :  { %v3814_v39 = vadd.f32 %v1253_v31, %v1249_v37 }
 0x70b   :  { %v1256_v40 = vpack.c.bf16 %v3814_v39, %v3812_v38 }
 0x70d   :  { %3136 = vmatmul.mubr.msk.bf16.vlgmr.msra.gmra.mrb[44].mxu1 %vm68_vm1, %v1256_v40 }
 0x70e   :  { %3149 = vmatprep.mubr.msk.bf16.mxu1 %vm3450_vm0, %v3449_v0  ;;  %3148 = vmatpush3.bf16.xpose.msra.mxu1 %v1438_v45 }
 0x70f   :  { %3159 = vmatprep.subr.bf16.mxu1 %v3449_v0 }
 0x722   :  { %v3331_v48 = vpop.permute.xlu0 %3330 }
 0x723   :  { %v3332_v49 = vunpack.i.l.bf16 %v3331_v48  ;;  %v3333_v50 = vunpack.i.h.bf16 %v3331_v48 }
 0x725   :  { %v3826_v51 = vpack.c.bf16 %v3332_v49, %v3332_v49  ;;  %v3828_v26 = vpack.c.bf16 %v3333_v50, %v3333_v50 }
 0x727   :  { %v1530_v55 = vsel %vm144_vm2, %v3826_v51, 0  ;;  %v1576_v60 = vsel %vm144_vm2, %v3828_v26, 0 }
 0x7e0   :  { %v1310_v52 = vpop.f32.mrb[44].mxu1 }
 0x7e1   :  { %v1418_v53 = vpack.c.bf16 %v1310_v52, %v1310_v52  ;;  %v3137_v54 = vpop.f32.mrb[45].mxu1 }
 0x7e2   :  { %v1313_v56 = vpop.f32.mrb[46].mxu1 }
 0x7e3   :  { %v1419_v57 = vpack.c.bf16 %v1313_v56, %v1313_v56  ;;  %v3138_v58 = vpop.f32.mrb[47].mxu1  ;;  %3150 = vmatmul.mubr.msk.bf16.vlgmr.msra.gmra.mrb[48].mxu1 %vm144_vm2, %v1418_v53  ;;  %v3344_v59 = vpack.i.bf16 %v1313_v56, %v1310_v52 }
 0x7e4   :  { %3160 = vmatpush3.bf16.xpose.msra.mxu1 %v1530_v55  ;;  %3161 = vmatprep.mubr.msk.bf16.mxu1 %vm3450_vm0, %v3449_v0 }
 0x7e5   :  { %3345 = vrot.lane.b32.xlu0 %v3344_v59, %s3454_s17  ;;  %3335 = vrot.lane.b32.xlu1 %v3344_v59, %s3452_s2 }
 0x7e6   :  { %3156 = vmatmul.mubr.msk.bf16.vlgmr.msra.gmra.mrb[44].mxu0 %vm144_vm2, %v1419_v57  ;;  %3171 = vmatprep.subr.bf16.mxu1 %v3449_v0 }
 0x7e7   :  { %3166 = vmatpush3.bf16.xpose.msra.mxu0 %v1576_v60  ;;  %3167 = vmatprep.mubr.msk.bf16.mxu0 %vm3450_vm0, %v3449_v0 }
 0x7e8   :  { %3177 = vmatprep.subr.bf16.mxu0 %v3449_v0 }
 0x7e9   :  { %3355 = vrot.lane.b32.xlu0 %v3344_v59, %s3451_s0  ;;  %3340 = vrot.lane.b32.xlu1 %v3329_v44, %s3454_s17 }
 0x7ed   :  { %1899 = vrot.lane.b32.xlu0 %v1426_v17, %s3453_s16  ;;  %3350 = vrot.lane.b32.xlu1 %v3329_v44, %s3451_s0 }
 0x7f1   :  { %1948 = vrot.lane.b32.xlu1 %v1427_v46, %s3453_s16 }
 0x857   :  { %v3336_v61 = vpop.permute.xlu1 %3335  ;;  %v3346_v3 = vpop.permute.xlu0 %3345 }
 0x858   :  { %v3338_v62 = vunpack.i.h.bf16 %v3336_v61  ;;  %v3337_v63 = vunpack.i.l.bf16 %v3336_v61  ;;  %v3347_v12 = vunpack.i.l.bf16 %v3346_v3  ;;  %v3348_v13 = vunpack.i.h.bf16 %v3346_v3 }
 0x85a   :  { %v1421_v1 = vpack.c.bf16 %v3338_v62, %v3338_v62  ;;  %v1420_v2 = vpack.c.bf16 %v3337_v63, %v3337_v63  ;;  %v1422_v19 = vpack.c.bf16 %v3347_v12, %v3347_v12  ;;  %v1423_v20 = vpack.c.bf16 %v3348_v13, %v3348_v13 }
 0x85b   :  { %v3341_v5 = vpop.permute.xlu1 %3340  ;;  %v3356_v21 = vpop.permute.xlu0 %3355 }
 0x85c   :  { %v3343_v6 = vunpack.i.h.bf16 %v3341_v5  ;;  %v3342_v8 = vunpack.i.l.bf16 %v3341_v5  ;;  %3162 = vmatmul.mubr.msk.bf16.vlgmr.msra.gmra.mrb[52].mxu1 %vm144_vm2, %v1420_v2  ;;  %3168 = vmatmul.mubr.msk.bf16.vlgmr.msra.gmra.mrb[48].mxu0 %vm144_vm2, %v1421_v1  ;;  %v3357_v28 = vunpack.i.l.bf16 %v3356_v21  ;;  %v3358_v29 = vunpack.i.h.bf16 %v3356_v21 }
 0x85d   :  { %3173 = vmatprep.mubr.msk.bf16.mxu1 %vm3450_vm0, %v3449_v0  ;;  %3179 = vmatprep.mubr.msk.bf16.mxu0 %vm3450_vm0, %v3449_v0 }
 0x85e   :  { %v3855_v9 = vpack.c.bf16 %v3343_v6, %v3343_v6  ;;  %v3857_v10 = vpack.c.bf16 %v3342_v8, %v3342_v8  ;;  %v1424_v34 = vpack.c.bf16 %v3357_v28, %v3357_v28  ;;  %v1425_v36 = vpack.c.bf16 %v3358_v29, %v3358_v29 }
 0x85f   :  { %v3351_v4 = vpop.permute.xlu1 %3350  ;;  %v1900_v33 = vpop.permute.xlu0 %1899 }
 0x860   :  { %v3352_v25 = vunpack.i.l.bf16 %v3351_v4  ;;  %v1622_v7 = vsel %vm144_vm2, %v3857_v10, 0  ;;  %v3353_v30 = vunpack.i.h.bf16 %v3351_v4  ;;  %v1668_v11 = vsel %vm144_vm2, %v3855_v9, 0 }
 0x861   :  { %3172 = vmatpush3.bf16.xpose.msra.mxu1 %v1622_v7  ;;  %3178 = vmatpush3.bf16.xpose.msra.mxu0 %v1668_v11  ;;  %v1905_v31 = vsel %vm635_vm3, %v1900_v33, 0 }
 0x862   :  { %3183 = vmatprep.subr.bf16.mxu1 %v3449_v0  ;;  %3189 = vmatprep.subr.bf16.mxu0 %v3449_v0  ;;  %v3865_v14 = vpack.c.bf16 %v3352_v25, %v3352_v25  ;;  %v3867_v15 = vpack.c.bf16 %v3353_v30, %v3353_v30 }
 0x863   :  { %v1949_v35 = vpop.permute.xlu1 %1948 }
 0x864   :  { %v1714_v22 = vsel %vm144_vm2, %v3865_v14, 0  ;;  %v1760_v24 = vsel %vm144_vm2, %v3867_v15, 0  ;;  %v1954_v37 = vsel %vm635_vm3, %v1949_v35, 0 }
 0x868   :  { %3174 = vmatmul.mubr.msk.bf16.vlgmr.msra.gmra.mrb[56].mxu1 %vm144_vm2, %v1422_v19  ;;  %3180 = vmatmul.mubr.msk.bf16.vlgmr.msra.gmra.mrb[52].mxu0 %vm144_vm2, %v1423_v20 }
 0x869   :  { %3184 = vmatpush3.bf16.xpose.msra.mxu1 %v1714_v22  ;;  %3190 = vmatpush3.bf16.xpose.msra.mxu0 %v1760_v24 }
 0x86a   :  { %3185 = vmatprep.mubr.msk.bf16.mxu1 %vm3450_vm0, %v3449_v0  ;;  %3191 = vmatprep.mubr.msk.bf16.mxu0 %vm3450_vm0, %v3449_v0 }
 0x86b   :  { %3195 = vmatprep.subr.bf16.mxu1 %v3449_v0  ;;  %3201 = vmatprep.subr.bf16.mxu0 %v3449_v0 }
 0x870   :  { %3186 = vmatmul.mubr.msk.bf16.vlgmr.msra.gmra.mrb[60].mxu1 %vm144_vm2, %v1424_v34  ;;  %3192 = vmatmul.mubr.msk.bf16.vlgmr.msra.gmra.mrb[56].mxu0 %vm144_vm2, %v1425_v36 }
 0x871   :  { %3196 = vmatpush3.bf16.msra.mxu1 %v1905_v31  ;;  %3202 = vmatpush3.bf16.msra.mxu0 %v1954_v37 }
 0x872   :  { %3197 = vmatprep.mubr.msk.bf16.mxu1 %vm3450_vm0, %v3449_v0  ;;  %3203 = vmatprep.mubr.msk.bf16.mxu0 %vm3450_vm0, %v3449_v0 }
 0x873   :  { %3207 = vmatprep.subr.bf16.mxu1 %v3449_v0  ;;  %3213 = vmatprep.subr.bf16.mxu0 %v3449_v0 }
 0x8b6   :  { %v1474_v40 = vpop.f32.mrb[48].mxu1 }
 0x8b7   :  { %v3151_v41 = vpop.f32.mrb[49].mxu1  ;;  %v1802_v42 = vsel %vm144_vm2, %v1474_v40, -inf }
 0x8b8   :  { %1803 = vmax.xlane.f32.xlu1 %v1802_v42  ;;  %v1477_v17 = vpop.f32.mrb[50].mxu1 }
 0x8b9   :  { %v1520_v18 = vpop.f32.mrb[44].mxu0  ;;  %v3152_v43 = vpop.f32.mrb[51].mxu1 }
 0x8ba   :  { %v3157_v44 = vpop.f32.mrb[45].mxu0  ;;  %v1805_v45 = vsel %vm144_vm2, %v1520_v18, -inf }
 0x8bb   :  { %1806 = vmax.xlane.f32.xlu0 %v1805_v45  ;;  %v1523_v46 = vpop.f32.mrb[46].mxu0 }
 0x8bc   :  { %v3158_v47 = vpop.f32.mrb[47].mxu0 }
 0x92f   :  { %v1566_v48 = vpop.f32.mrb[52].mxu1  ;;  %v1612_v49 = vpop.f32.mrb[48].mxu0 }
 0x930   :  { %v3163_v50 = vpop.f32.mrb[53].mxu1  ;;  %v3169_v52 = vpop.f32.mrb[49].mxu0  ;;  %v1811_v53 = vsel %vm144_vm2, %v1612_v49, -inf  ;;  %v1808_v54 = vsel %vm144_vm2, %v1566_v48, -inf }
 0x931   :  { %v1615_v55 = vpop.f32.mrb[50].mxu0  ;;  %1812 = vmax.xlane.f32.xlu1 %v1811_v53  ;;  %1809 = vmax.xlane.f32.xlu0 %v1808_v54  ;;  %v1569_v56 = vpop.f32.mrb[54].mxu1 }
 0x932   :  { %v3164_v57 = vpop.f32.mrb[55].mxu1  ;;  %v3170_v58 = vpop.f32.mrb[51].mxu0 }
 0x93b   :  { %v3895_v59 = vpop.f32.mrb[56].mxu1  ;;  %v1704_v60 = vpop.f32.mrb[52].mxu0 }
 0x93c   :  { %v3175_v61 = vpop.f32.mrb[57].mxu1  ;;  %v1814_v62 = vsel %vm144_vm2, %v3895_v59, -inf  ;;  %v3181_v63 = vpop.f32.mrb[53].mxu0  ;;  %v1817_v1 = vsel %vm144_vm2, %v1704_v60, -inf }
 0x93d   :  { %1815 = vmax.xlane.f32.xlu0 %v1814_v62  ;;  %v1661_v2 = vpop.f32.mrb[58].mxu1  ;;  %v1707_v5 = vpop.f32.mrb[54].mxu0  ;;  %1818 = vmax.xlane.f32.xlu1 %v1817_v1 }
 0x93e   :  { %v3176_v6 = vpop.f32.mrb[59].mxu1  ;;  %v3182_v8 = vpop.f32.mrb[55].mxu0 }
 0x943   :  { %v3900_v3 = vpop.f32.mrb[60].mxu1  ;;  %v1796_v4 = vpop.f32.mrb[56].mxu0 }
 0x944   :  { %v3187_v25 = vpop.f32.mrb[61].mxu1  ;;  %v1820_v7 = vsel %vm144_vm2, %v3900_v3, -inf  ;;  %v3193_v30 = vpop.f32.mrb[57].mxu0  ;;  %v1823_v11 = vsel %vm144_vm2, %v1796_v4, -inf }
 0x945   :  { %1821 = vmax.xlane.f32.xlu0 %v1820_v7  ;;  %v1799_v12 = vpop.f32.mrb[58].mxu0  ;;  %1824 = vmax.xlane.f32.xlu1 %v1823_v11  ;;  %v1753_v13 = vpop.f32.mrb[62].mxu1 }
 0x946   :  { %v3188_v19 = vpop.f32.mrb[63].mxu1  ;;  %v3194_v20 = vpop.f32.mrb[59].mxu0 }
 0x947   :  { %v1804_v21 = vpop.xlane.xlu1 %1803 }
 0x948   :  { %v1807_v22 = vpop.xlane.xlu0 %1806  ;;  %v1826_v24 = vsub.f32 %v1474_v40, %v1804_v21 }
 0x949   :  { %v1827_v28 = vsub.f32 %v1520_v18, %v1807_v22 }
 0x94a   :  { %v1834_v29 = vmul.f32 1.442695, %v1826_v24 }
 0x94b   :  { %v1836_v33 = vmul.f32 1.442695, %v1827_v28 }
 0x94c   :  { %3407 = vpow2.f32 %v1834_v29 }
 0x94d   :  { %3409 = vpow2.f32 %v1836_v33 }
 0x956   :  { %1997 = vrot.lane.b32.xlu1 %v3826_v51, %s3453_s16  ;;  %v3408_v34 = vpop.eup %3407 }
 0x957   :  { %v3410_v35 = vpop.eup %3409  ;;  %v1850_v36 = vsel %vm144_vm2, %v3408_v34, 0.0 }
 0x958   :  { %v1853_v31 = vsel %vm144_vm2, %v3410_v35, 0.0 }
 0x95b   :  { %2046 = vrot.lane.b32.xlu0 %v3828_v26, %s3453_s16 }
 0x97a   :  { %1851 = vadd.xlane.f32.xlu0 %v1850_v36  ;;  %1854 = vadd.xlane.f32.xlu1 %v1853_v31 }
 0x98b   :  { %2095 = vrot.lane.b32.xlu1 %v3857_v10, %s3453_s16 }
 0x9be   :  { %v1813_v51 = vpop.xlane.xlu1 %1812  ;;  %v1810_v26 = vpop.xlane.xlu0 %1809 }
 0x9bf   :  { %v1829_v37 = vsub.f32 %v1612_v49, %v1813_v51  ;;  %v1828_v40 = vsub.f32 %v1566_v48, %v1810_v26 }
 0x9c1   :  { %v1840_v41 = vmul.f32 1.442695, %v1829_v37  ;;  %v1838_v42 = vmul.f32 1.442695, %v1828_v40 }
 0x9c3   :  { %3411 = vpow2.f32 %v1840_v41 }
 0x9c4   :  { %3413 = vpow2.f32 %v1838_v42 }
 0x9ca   :  { %v1819_v17 = vpop.xlane.xlu1 %1818  ;;  %v1816_v55 = vpop.xlane.xlu0 %1815 }
 0x9cb   :  { %v1831_v18 = vsub.f32 %v1704_v60, %v1819_v17  ;;  %v1830_v56 = vsub.f32 %v3895_v59, %v1816_v55 }
 0x9cd   :  { %v3913_v43 = vpop.eup %3411  ;;  %v1844_v45 = vmul.f32 1.442695, %v1831_v18  ;;  %v1842_v58 = vmul.f32 1.442695, %v1830_v56  ;;  %v2290_v18 = vld [vmem:[%s4089_s6] sm:$0xf] }
 0x9ce   :  { %v3915_v44 = vpop.eup %3413  ;;  %v1859_v46 = vsel %vm144_vm2, %v3913_v43, 0.0 }
 0x9cf   :  { %1860 = vadd.xlane.f32.xlu1 %v1859_v46  ;;  %v1856_v10 = vsel %vm144_vm2, %v3915_v44, 0.0  ;;  %3415 = vpow2.f32 %v1844_v45  ;;  %v2347_v46 = vsel %vm635_vm3, %v2290_v18, 0 }
 0x9d0   :  { %1857 = vadd.xlane.f32.xlu0 %v1856_v10 }
 0x9d2   :  { %v1825_v47 = vpop.xlane.xlu1 %1824  ;;  %v1822_v57 = vpop.xlane.xlu0 %1821 }
 0x9d3   :  { %v1833_v48 = vsub.f32 %v1796_v4, %v1825_v47  ;;  %v1832_v60 = vsub.f32 %v3900_v3, %v1822_v57 }
 0x9d5   :  { %v1848_v49 = vmul.f32 1.442695, %v1833_v48  ;;  %v1846_v61 = vmul.f32 1.442695, %v1832_v60 }
 0x9d6   :  { %v2047_v63 = vpop.permute.xlu0 %2046  ;;  %v1998_v1 = vpop.permute.xlu1 %1997 }
 0x9d7   :  { %3417 = vpow2.f32 %v1848_v49  ;;  %v2003_v30 = vsel %vm635_vm3, %v1998_v1, 0  ;;  %v2052_v11 = vsel %vm635_vm3, %v2047_v63, 0 }
 0x9d8   :  { %3419 = vpow2.f32 %v1842_v58 }
 0x9d9   :  { %v3921_v50 = vpop.eup %3415  ;;  %3421 = vpow2.f32 %v1846_v61 }
 0x9da   :  { %v1865_v52 = vsel %vm144_vm2, %v3921_v50, 0.0 }
 0x9db   :  { %1866 = vadd.xlane.f32.xlu1 %v1865_v52 }
 0x9e1   :  { %v3925_v53 = vpop.eup %3417 }
 0x9e2   :  { %v1871_v54 = vsel %vm144_vm2, %v3925_v53, 0.0  ;;  %v3935_v62 = vpop.eup %3419 }
 0x9e3   :  { %1872 = vadd.xlane.f32.xlu1 %v1871_v54  ;;  %v3939_v2 = vpop.eup %3421  ;;  %v2291_v54 = vld [vmem:[%s4089_s6 + $0x4] sm:$0xf] }
 0x9e4   :  { %v1868_v6 = vsel %vm144_vm2, %v3939_v2, 0.0  ;;  %v2300_v55 = vsel %vm635_vm3, %v2291_v54, 0 }
 0x9e6   :  { %2144 = vrot.lane.b32.xlu0 %v3855_v9, %s3453_s16  ;;  %v1862_v9 = vsel %vm144_vm2, %v3935_v62, 0.0 }
 0x9f4   :  { %2193 = vrot.lane.b32.xlu1 %v3865_v14, %s3453_s16 }
 0xa05   :  { %1863 = vadd.xlane.f32.xlu0 %v1862_v9 }
 0xa07   :  { %v1852_v59 = vpop.xlane.xlu0 %1851  ;;  %v1855_v5 = vpop.xlane.xlu1 %1854 }
 0xa08   :  { %3423 = vrcp.f32 %v1852_v59 }
 0xa09   :  { %3425 = vrcp.f32 %v1855_v5  ;;  %1869 = vadd.xlane.f32.xlu0 %v1868_v6  ;;  %v2292_v5 = vld [vmem:[%s4089_s6 + $0x8] sm:$0xf] }
 0xa0b   :  { %v2096_v12 = vpop.permute.xlu1 %2095 }
 0xa12   :  { %v3424_v14 = vpop.eup %3423 }
 0xa13   :  { %v3426_v8 = vpop.eup %3425  ;;  %v1882_v3 = vmul.f32 %v3424_v14, %v3408_v34 }
 0xa14   :  { %v1883_v4 = vmul.f32 %v3426_v8, %v3410_v35 }
 0xa15   :  { %v1890_v25 = vpack.c.bf16 %v1882_v3, %v1882_v3 }
 0xa16   :  { %v1891_v7 = vpack.c.bf16 %v1883_v4, %v1883_v4 }
 0xa17   :  { %3198 = vmatmul.mubr.msk.bf16.vlgmr.msra.gmra.mrb[64].mxu1 %vm144_vm2, %v1890_v25 }
 0xa18   :  { %3204 = vmatmul.mubr.msk.bf16.vlgmr.msra.gmra.mrb[60].mxu0 %vm144_vm2, %v1891_v7  ;;  %3208 = vmatpush3.bf16.msra.mxu1 %v2003_v30  ;;  %v2395_v7 = vsel %vm635_vm3, %v2292_v5, 0 }
 0xa19   :  { %3214 = vmatpush3.bf16.msra.mxu0 %v2052_v11  ;;  %3209 = vmatprep.mubr.msk.bf16.mxu1 %vm3450_vm0, %v3449_v0 }
 0xa1a   :  { %3215 = vmatprep.mubr.msk.bf16.mxu0 %vm3450_vm0, %v3449_v0  ;;  %3219 = vmatprep.subr.bf16.mxu1 %v3449_v0 }
 0xa1b   :  { %3225 = vmatprep.subr.bf16.mxu0 %v3449_v0 }
 0xa1f   :  { %2242 = vrot.lane.b32.xlu0 %v3867_v15, %s3453_s16  ;;  %v2101_v15 = vsel %vm635_vm3, %v2096_v12, 0 }
 0xa5c   :  { %v1861_v13 = vpop.xlane.xlu1 %1860 }
 0xa5d   :  { %3427 = vrcp.f32 %v1861_v13  ;;  %v1858_v19 = vpop.xlane.xlu0 %1857 }
 0xa5e   :  { %3429 = vrcp.f32 %v1858_v19 }
 0xa61   :  { %v2145_v28 = vpop.permute.xlu0 %2144 }
 0xa62   :  { %v2150_v35 = vsel %vm635_vm3, %v2145_v28, 0 }
 0xa67   :  { %v3428_v20 = vpop.eup %3427 }
 0xa68   :  { %v3430_v21 = vpop.eup %3429  ;;  %v1885_v22 = vmul.f32 %v3428_v20, %v3913_v43  ;;  %v1867_v29 = vpop.xlane.xlu1 %1866 }
 0xa69   :  { %v1884_v24 = vmul.f32 %v3430_v21, %v3915_v44  ;;  %3431 = vrcp.f32 %v1867_v29 }
 0xa6a   :  { %v1893_v33 = vpack.c.bf16 %v1885_v22, %v1885_v22 }
 0xa6b   :  { %v1892_v34 = vpack.c.bf16 %v1884_v24, %v1884_v24 }
 0xa6c   :  { %3216 = vmatmul.mubr.msk.bf16.vlgmr.msra.gmra.mrb[64].mxu0 %vm144_vm2, %v1893_v33 }
 0xa6d   :  { %3210 = vmatmul.mubr.msk.bf16.vlgmr.msra.gmra.mrb[68].mxu1 %vm144_vm2, %v1892_v34  ;;  %3226 = vmatpush3.bf16.msra.mxu0 %v2150_v35 }
 0xa6e   :  { %3220 = vmatpush3.bf16.msra.mxu1 %v2101_v15  ;;  %3227 = vmatprep.mubr.msk.bf16.mxu0 %vm3450_vm0, %v3449_v0 }
 0xa6f   :  { %3237 = vmatprep.subr.bf16.mxu0 %v3449_v0  ;;  %3221 = vmatprep.mubr.msk.bf16.mxu1 %vm3450_vm0, %v3449_v0 }
 0xa70   :  { %3231 = vmatprep.subr.bf16.mxu1 %v3449_v0  ;;  %v1873_v26 = vpop.xlane.xlu1 %1872 }
 0xa71   :  { %3433 = vrcp.f32 %v1873_v26 }
 0xa73   :  { %v3432_v36 = vpop.eup %3431 }
 0xa74   :  { %v1887_v31 = vmul.f32 %v3432_v36, %v3921_v50  ;;  %v2194_v47 = vpop.permute.xlu1 %2193 }
 0xa75   :  { %v2199_v50 = vsel %vm635_vm3, %v2194_v47, 0 }
 0xa76   :  { %v1895_v51 = vpack.c.bf16 %v1887_v31, %v1887_v31 }
 0xa78   :  { %3228 = vmatmul.mubr.msk.bf16.vlgmr.msra.gmra.mrb[68].mxu0 %vm144_vm2, %v1895_v51 }
 0xa79   :  { %3239 = vmatprep.mubr.msk.bf16.mxu0 %vm3450_vm0, %v3449_v0 }
 0xa7b   :  { %v3434_v40 = vpop.eup %3433 }
 0xa7c   :  { %v1889_v42 = vmul.f32 %v3434_v40, %v3925_v53 }
 0xa7e   :  { %v1897_v45 = vpack.c.bf16 %v1889_v42, %v1889_v42 }
 0xa92   :  { %v1864_v37 = vpop.xlane.xlu0 %1863 }
 0xa93   :  { %3435 = vrcp.f32 %v1864_v37 }
 0xa96   :  { %v1870_v41 = vpop.xlane.xlu0 %1869 }
 0xa97   :  { %3437 = vrcp.f32 %v1870_v41 }
 0xa9a   :  { %v2243_v17 = vpop.permute.xlu0 %2242 }
 0xa9b   :  { %v2248_v43 = vsel %vm635_vm3, %v2243_v17, 0 }
 0xa9c   :  { %3238 = vmatpush3.bf16.msra.mxu0 %v2248_v43 }
 0xa9d   :  { %v3436_v44 = vpop.eup %3435  ;;  %3249 = vmatprep.subr.bf16.mxu0 %v3449_v0 }
 0xa9e   :  { %v1886_v10 = vmul.f32 %v3436_v44, %v3935_v62 }
 0xa9f   :  { %3240 = vmatmul.mubr.msk.bf16.vlgmr.msra.gmra.mrb[72].mxu0 %vm144_vm2, %v1897_v45 }
 0xaa0   :  { %v1894_v48 = vpack.c.bf16 %v1886_v10, %v1886_v10  ;;  %3250 = vmatpush3.bf16.msra.mxu0 %v2347_v46  ;;  %3251 = vmatprep.mubr.msk.bf16.mxu0 %vm3450_vm0, %v3449_v0 }
 0xaa1   :  { %v3438_v49 = vpop.eup %3437  ;;  %3261 = vmatprep.subr.bf16.mxu0 %v3449_v0 }
 0xaa2   :  { %3222 = vmatmul.mubr.msk.bf16.vlgmr.msra.gmra.mrb[72].mxu1 %vm144_vm2, %v1894_v48  ;;  %v1888_v52 = vmul.f32 %v3438_v49, %v3939_v2  ;;  %v2293_v2 = vld [vmem:[%s4089_s6 + $0xc] sm:$0xf] }
 0xaa3   :  { %3232 = vmatpush3.bf16.msra.mxu1 %v2199_v50  ;;  %3233 = vmatprep.mubr.msk.bf16.mxu1 %vm3450_vm0, %v3449_v0  ;;  %v2445_v59 = vsel %vm635_vm3, %v2293_v2, 0 }
 0xaa4   :  { %3243 = vmatprep.subr.bf16.mxu1 %v3449_v0  ;;  %v1896_v53 = vpack.c.bf16 %v1888_v52, %v1888_v52 }
 0xaaa   :  { %3234 = vmatmul.mubr.msk.bf16.vlgmr.msra.gmra.mrb[76].mxu1 %vm144_vm2, %v1896_v53 }
 0xaab   :  { %3245 = vmatprep.mubr.msk.bf16.mxu1 %vm3450_vm0, %v3449_v0  ;;  %3244 = vmatpush3.bf16.msra.mxu1 %v2300_v55 }
 0xaac   :  { %3255 = vmatprep.subr.bf16.mxu1 %v3449_v0 }
 0xaea   :  { %v1941_v56 = vpop.f32.mrb[64].mxu1 }
 0xaeb   :  { %v1990_v57 = vpop.f32.mrb[60].mxu0  ;;  %v3199_v58 = vpop.f32.mrb[65].mxu1 }
 0xaec   :  { %v2294_v60 = vpack.c.bf16 %v1990_v57, %v1941_v56  ;;  %v3205_v61 = vpop.f32.mrb[61].mxu0  ;;  %v1944_v62 = vpop.f32.mrb[66].mxu1 }
 0xaed   :  { %v1993_v63 = vpop.f32.mrb[62].mxu0  ;;  %v3200_v1 = vpop.f32.mrb[67].mxu1 }
 0xaee   :  { %v3206_v9 = vpop.f32.mrb[63].mxu0  ;;  %3252 = vmatmul.mubr.msk.bf16.vlgmr.msra.gmra.mrb[76].mxu0 %vm144_vm2, %v2294_v60 }
 0xaef   :  { %3263 = vmatprep.mubr.msk.bf16.mxu0 %vm3450_vm0, %v3449_v0  ;;  %3262 = vmatpush3.bf16.msra.mxu0 %v2445_v59 }
 0xaf0   :  { %3275 = vmatprep.subr.bf16.mxu0 %v3449_v0 }
 0xb3f   :  { %v2088_v6 = vpop.f32.mrb[64].mxu0 }
 0xb40   :  { %v2039_v14 = vpop.f32.mrb[68].mxu1  ;;  %v3217_v8 = vpop.f32.mrb[65].mxu0 }
 0xb41   :  { %v2295_v3 = vpack.c.bf16 %v2088_v6, %v2039_v14  ;;  %v3211_v4 = vpop.f32.mrb[69].mxu1  ;;  %v2091_v25 = vpop.f32.mrb[66].mxu0 }
 0xb42   :  { %v2042_v30 = vpop.f32.mrb[70].mxu1  ;;  %v3218_v11 = vpop.f32.mrb[67].mxu0 }
 0xb43   :  { %v3212_v12 = vpop.f32.mrb[71].mxu1  ;;  %3246 = vmatmul.mubr.msk.bf16.vlgmr.msra.gmra.mrb[80].mxu1 %vm144_vm2, %v2295_v3  ;;  %v3367_v30 = vld [vmem:[%s4091_s9] sm:$0xff]   ;;  %v3368_v11 = vld [vmem:[%s4091_s9 + $0x8] sm:$0xff]  }
 0xb44   :  { %3256 = vmatpush3.bf16.msra.mxu1 %v2395_v7  ;;  %3257 = vmatprep.mubr.msk.bf16.mxu1 %vm3450_vm0, %v3449_v0  ;;  %v3366_v7 = vld [vmem:[%s4090_s7 + $0x8] sm:$0xff]  }
 0xb45   :  { %3267 = vmatprep.subr.bf16.mxu1 %v3449_v0 }
 0xb4b   :  { %v2186_v13 = vpop.f32.mrb[68].mxu0 }
 0xb4c   :  { %v3229_v19 = vpop.f32.mrb[69].mxu0 }
 0xb4d   :  { %v2189_v20 = vpop.f32.mrb[70].mxu0 }
 0xb4e   :  { %v3230_v21 = vpop.f32.mrb[71].mxu0 }
 0xb72   :  { %v2284_v22 = vpop.f32.mrb[72].mxu0 }
 0xb73   :  { %v3241_v24 = vpop.f32.mrb[73].mxu0 }
 0xb74   :  { %v2287_v28 = vpop.f32.mrb[74].mxu0  ;;  %v2520_v24 = vsub.s32 1, %v3797_v23 }
 0xb75   :  { %v2137_v29 = vpop.f32.mrb[72].mxu1  ;;  %v3242_v33 = vpop.f32.mrb[75].mxu0 }
 0xb76   :  { %v2390_v34 = vpack.c.bf16 %v2186_v13, %v2137_v29  ;;  %v3223_v35 = vpop.f32.mrb[73].mxu1  ;;  %v2521_v28 = vrot.slane %v3803_v27, %v2520_v24  ;;  %v3370_v27 = vld [vmem:[%s4091_s9 + $0x18] sm:$0xff]  }
 0xb77   :  { %v2140_v15 = vpop.f32.mrb[74].mxu1 }
 0xb78   :  { %v3224_v36 = vpop.f32.mrb[75].mxu1  ;;  %3258 = vmatmul.mubr.msk.bf16.vlgmr.msra.gmra.mrb[84].mxu1 %vm144_vm2, %v2390_v34 }
 0xb79   :  { %3271 = vmatprep.mubr.msk.bf16.mxu1 %vm3450_vm0, %v3449_v0  ;;  %v2527_v36 = vrot.slane %v3809_v32, %v2520_v24  ;;  %v2880_v32 = vld [vmem:[%s4092_s8] ss:$0 sm:$0xff] }
 0xb7d   :  { %v2235_v31 = vpop.f32.mrb[76].mxu1 }
 0xb7e   :  { %v2440_v51 = vpack.c.bf16 %v2284_v22, %v2235_v31  ;;  %v3235_v26 = vpop.f32.mrb[77].mxu1 }
 0xb7f   :  { %v2238_v37 = vpop.f32.mrb[78].mxu1 }
 0xb80   :  { %v3236_v40 = vpop.f32.mrb[79].mxu1  ;;  %3264 = vmatmul.mubr.msk.bf16.vlgmr.msra.gmra.mrb[80].mxu0 %vm144_vm2, %v2440_v51 }
 0xb81   :  { %3283 = vmatprep.mubr.msk.bf16.mxu0 %vm3450_vm0, %v3449_v0  ;;  %3276 = vmatpush3.bf16.msra.mxu0 %v3367_v30  ;;  %v3369_v40 = vld [vmem:[%s4091_s9 + $0x10] sm:$0xff]  }
 0xb82   :  { %3277 = vmatprep.subr.bf16.mxu0 %v3449_v0 }
 0xb85   :  { %3278 = vmatpush3.bf16.msra.mxu0 %v3368_v11  ;;  %v2715_v11 = vsub.s32 2, %v3797_v23 }
 0xb86   :  { %3279 = vmatprep.subr.bf16.mxu0 %v3449_v0 }
 0xb89   :  { %3280 = vmatpush3.bf16.msra.mxu0 %v3369_v40 }
 0xb8a   :  { %3281 = vmatprep.subr.bf16.mxu0 %v3449_v0 }
 0xb8d   :  { %3282 = vmatpush3.bf16.msra.mxu0 %v3370_v27 }
 0xbc1   :  { %v2383_v41 = vpop.f32.mrb[76].mxu0 }
 0xbc2   :  { %v3253_v42 = vpop.f32.mrb[77].mxu0 }
 0xbc3   :  { %v2386_v17 = vpop.f32.mrb[78].mxu0 }
 0xbc4   :  { %v3254_v18 = vpop.f32.mrb[79].mxu0 }
 0xc16   :  { %v2336_v43 = vpop.f32.mrb[80].mxu1 }
 0xc17   :  { %v2384_v44 = vadd.f32 %v2383_v41, %v2336_v43  ;;  %v3247_v45 = vpop.f32.mrb[81].mxu1 }
 0xc18   :  { %v2339_v46 = vpop.f32.mrb[82].mxu1 }
 0xc19   :  { %v2387_v10 = vadd.f32 %v2386_v17, %v2339_v46  ;;  %v3248_v47 = vpop.f32.mrb[83].mxu1 }
 0xc4b   :  { %v2431_v48 = vpop.f32.mrb[84].mxu1 }
 0xc4c   :  { %v2438_v49 = vadd.f32 %v2431_v48, %v2384_v44  ;;  %v3259_v50 = vpop.f32.mrb[85].mxu1 }
 0xc4d   :  { %v2434_v52 = vpop.f32.mrb[86].mxu1 }
 0xc4e   :  { %v2439_v53 = vadd.f32 %v2434_v52, %v2387_v10  ;;  %v3260_v54 = vpop.f32.mrb[87].mxu1 }
 0xc53   :  { %v2481_v55 = vpop.f32.mrb[80].mxu0 }
 0xc54   :  { %v2488_v56 = vadd.f32 %v2481_v55, %v2438_v49  ;;  %v3265_v57 = vpop.f32.mrb[81].mxu0 }
 0xc55   :  { %v2484_v58 = vpop.f32.mrb[82].mxu0 }
 0xc56   :  { %v2489_v60 = vadd.f32 %v2484_v58, %v2439_v53  ;;  %v3266_v61 = vpop.f32.mrb[83].mxu0  ;;  %v2490_v62 = vadd.f32 %v2488_v56, %v3812_v38 }
 0xc58   :  { %v2492_v63 = vsel %vm68_vm1, %v2490_v62, 0.0  ;;  %v2491_v1 = vadd.f32 %v2489_v60, %v3814_v39  ;;  %v3365_v39 = vld [vmem:[%s4090_s7] sm:$0xff]  }
 0xc59   :  { %2493 = vadd.xlane.f32.xlu1 %v2492_v63  ;;  %3268 = vmatpush3.bf16.msra.mxu1 %v3365_v39 }
 0xc5a   :  { %v2495_v9 = vsel %vm68_vm1, %v2491_v1, 0.0  ;;  %3269 = vmatprep.subr.bf16.mxu1 %v3449_v0  ;;  %v2884_v0 = vld [vmem:[%s4093_s10] ss:$0 sm:$0xff] }
 0xc5b   :  { %2496 = vadd.xlane.f32.xlu0 %v2495_v9 }
 0xc5d   :  { %3270 = vmatpush3.bf16.msra.mxu1 %v3366_v7 }
 0xce6   :  { %v2494_v2 = vpop.xlane.xlu1 %2493 }
 0xce7   :  { %v2498_v59 = vmul.f32 0.03125, %v2494_v2 }
 0xce8   :  { %v2497_v5 = vpop.xlane.xlu0 %2496 }
 0xce9   :  { %v2500_v6 = vsub.f32 %v2490_v62, %v2498_v59  ;;  %v2499_v14 = vmul.f32 0.03125, %v2497_v5 }
 0xceb   :  { %v2501_v8 = vsub.f32 %v2491_v1, %v2499_v14  ;;  %v2502_v3 = vmul.f32 %v2500_v6, %v2500_v6  ;;  %v2731_v14 = vand.u32 127, %v1244_v16 }
 0xced   :  { %v2504_v4 = vsel %vm68_vm1, %v2502_v3, 0.0  ;;  %v2503_v25 = vmul.f32 %v2501_v8, %v2501_v8  ;;  %vm2732_vm5 = vcmp.eq.s32.totalorder %v3797_v23, %v2731_v14  ;;  %v2728_v3 = vadd.s32 16, %v3797_v23 }
 0xcee   :  { %2505 = vadd.xlane.f32.xlu0 %v2504_v4  ;;  %v2729_v4 = vadd.s32 24, %v3797_v23 }
 0xcef   :  { %v2507_v38 = vsel %vm68_vm1, %v2503_v25, 0.0  ;;  %vm2734_vm8 = vcmp.eq.s32.totalorder %v2728_v3, %v2731_v14 }
 0xcf0   :  { %2508 = vadd.xlane.f32.xlu1 %v2507_v38  ;;  %vm2735_vm9 = vcmp.eq.s32.totalorder %v2729_v4, %v2731_v14 }
 0xcf1   :  { %vm3302_vm10 = vmpackc.low %vm2735_vm9, %vm2734_vm8 }
 0xd7b   :  { %v2506_v12 = vpop.xlane.xlu0 %2505 }
 0xd7c   :  { %v2510_v13 = vmul.f32 0.03125, %v2506_v12  ;;  %v3447_v12 = vld [vmem:[%s4087_s11] sm:$0x7] }
 0xd7d   :  { %v2509_v19 = vpop.xlane.xlu1 %2508 }
 0xd7e   :  { %v2512_v20 = vadd.f32 1e-05, %v2510_v13  ;;  %v2511_v21 = vmul.f32 0.03125, %v2509_v19  ;;  %v2716_v13 = vrot.slane %v3447_v12, %v2715_v11 }
 0xd80   :  { %3439 = vrsqrt.f32 %v2512_v20  ;;  %v2513_v22 = vadd.f32 1e-05, %v2511_v21  ;;  %v3448_v21 = vld [vmem:[%s4088_s12] sm:$0x7] }
 0xd82   :  { %3441 = vrsqrt.f32 %v2513_v22  ;;  %v2722_v22 = vrot.slane %v3448_v21, %v2715_v11 }
 0xd8a   :  { %v3440_v29 = vpop.eup %3439 }
 0xd8b   :  { %v2516_v33 = vmul.f32 %v3440_v29, %v2500_v6  ;;  %v2727_v6 = vadd.s32 8, %v3797_v23 }
 0xd8c   :  { %v3442_v34 = vpop.eup %3441 }
 0xd8d   :  { %v2522_v35 = vmul.f32 %v2521_v28, %v2516_v33  ;;  %v2517_v15 = vmul.f32 %v3442_v34, %v2501_v8  ;;  %vm2733_vm6 = vcmp.eq.s32.totalorder %v2727_v6, %v2731_v14  ;;  %v3456_v8 = vmov 1.0|1.0  }
 0xd8e   :  { %vm3298_vm7 = vmpackc.low %vm2733_vm6, %vm2732_vm5 }
 0xd8f   :  { %v2523_v31 = vmul.f32 %v2521_v28, %v2517_v15  ;;  %v2528_v51 = vadd.f32 %v2527_v36, %v2522_v35  ;;  %3299 = vmatprep.subr.msk.bf16.mxu1 %vm3298_vm7, %v3456_v8 }
 0xd91   :  { %v2529_v26 = vadd.f32 %v2527_v36, %v2523_v31 }
 0xd93   :  { %v2530_v37 = vpack.c.bf16 %v2529_v26, %v2528_v51 }
 0xd95   :  { %3272 = vmatmul.mubr.msk.bf16.vlgmr.msra.gmra.mrb[88].mxu1 %vm68_vm1, %v2530_v37 }
 0xd96   :  { %3301 = vmatpush3.bf16.msk.msra.mxu1 %vm3298_vm7, %v3456_v8 }
 0xd97   :  { %3303 = vmatprep.subr.msk.bf16.mxu1 %vm3302_vm10, %v3456_v8 }
 0xd9a   :  { %3305 = vmatpush3.bf16.msk.msra.mxu1 %vm3302_vm10, %v3456_v8 }
 0xe68   :  { %v2591_v41 = vpop.f32.mrb[88].mxu1 }
 0xe69   :  { %v2592_v42 = vadd.f32 %v2880_v32, %v2591_v41  ;;  %v3273_v17 = vpop.f32.mrb[89].mxu1 }
 0xe6a   :  { %v2594_v18 = vpop.f32.mrb[90].mxu1 }
 0xe6b   :  { %v2595_v43 = vadd.f32 %v2880_v32, %v2594_v18  ;;  %v3274_v44 = vpop.f32.mrb[91].mxu1  ;;  %v2598_v45 = vmax.f32 %v2592_v42, 0.0 }
 0xe6d   :  { %v2599_v46 = vmax.f32 %v2595_v43, 0.0 }
 0xe6f   :  { %v2600_v10 = vpack.c.bf16 %v2599_v46, %v2598_v45 }
 0xe71   :  { %3284 = vmatmul.mubr.msk.bf16.vlgmr.msra.gmra.mrb[84].mxu0 %vm2640_vm4, %v2600_v10 }
 0xf44   :  { %v2678_v47 = vpop.f32.mrb[84].mxu0 }
 0xf45   :  { %v2679_v48 = vadd.f32 %v2884_v0, %v2678_v47  ;;  %v3285_v49 = vpop.f32.mrb[85].mxu0 }
 0xf46   :  { %v2681_v50 = vpop.f32.mrb[86].mxu0 }
 0xf47   :  { %v2682_v52 = vadd.f32 %v2884_v0, %v2681_v50  ;;  %v3286_v53 = vpop.f32.mrb[87].mxu0  ;;  %v2685_v54 = vadd.f32 %v2679_v48, %v2528_v51 }
 0xf49   :  { %v2687_v55 = vsel %vm68_vm1, %v2685_v54, 0.0  ;;  %v2686_v56 = vadd.f32 %v2682_v52, %v2529_v26 }
 0xf4a   :  { %2688 = vadd.xlane.f32.xlu0 %v2687_v55 }
 0xf4b   :  { %v2690_v57 = vsel %vm68_vm1, %v2686_v56, 0.0 }
 0xf4c   :  { %2691 = vadd.xlane.f32.xlu1 %v2690_v57 }
 0xfd7   :  { %v2689_v58 = vpop.xlane.xlu0 %2688 }
 0xfd8   :  { %v2693_v60 = vmul.f32 0.03125, %v2689_v58 }
 0xfd9   :  { %v2692_v61 = vpop.xlane.xlu1 %2691 }
 0xfda   :  { %v2695_v62 = vsub.f32 %v2685_v54, %v2693_v60  ;;  %v2694_v63 = vmul.f32 0.03125, %v2692_v61 }
 0xfdc   :  { %v2696_v1 = vsub.f32 %v2686_v56, %v2694_v63  ;;  %v2697_v9 = vmul.f32 %v2695_v62, %v2695_v62 }
 0xfde   :  { %v2699_v2 = vsel %vm68_vm1, %v2697_v9, 0.0  ;;  %v2698_v59 = vmul.f32 %v2696_v1, %v2696_v1 }
 0xfdf   :  { %2700 = vadd.xlane.f32.xlu0 %v2699_v2 }
 0xfe0   :  { %v2702_v5 = vsel %vm68_vm1, %v2698_v59, 0.0 }
 0xfe1   :  { %2703 = vadd.xlane.f32.xlu1 %v2702_v5 }
0x106c   :  { %v2701_v25 = vpop.xlane.xlu0 %2700 }
0x106d   :  { %v2705_v38 = vmul.f32 0.03125, %v2701_v25 }
0x106e   :  { %v2704_v39 = vpop.xlane.xlu1 %2703 }
0x106f   :  { %v2707_v16 = vadd.f32 1e-05, %v2705_v38  ;;  %v2706_v7 = vmul.f32 0.03125, %v2704_v39 }
0x1071   :  { %3443 = vrsqrt.f32 %v2707_v16  ;;  %v2708_v30 = vadd.f32 1e-05, %v2706_v7 }
0x1073   :  { %3445 = vrsqrt.f32 %v2708_v30 }
0x107b   :  { %v3444_v19 = vpop.eup %3443 }
0x107c   :  { %v2711_v20 = vmul.f32 %v3444_v19, %v2695_v62 }
0x107d   :  { %v3446_v24 = vpop.eup %3445 }
0x107e   :  { %v2712_v28 = vmul.f32 %v3446_v24, %v2696_v1  ;;  %v2717_v29 = vmul.f32 %v2716_v13, %v2711_v20 }
0x1080   :  { %v2718_v33 = vmul.f32 %v2716_v13, %v2712_v28  ;;  %v2723_v34 = vadd.f32 %v2722_v22, %v2717_v29 }
0x1082   :  { %v2724_v35 = vadd.f32 %v2722_v22, %v2718_v33  ;;  %3295 = vmatprep.mubr.msk.f32.mxu1 %vm68_vm1, %v2723_v34 }
0x1084   :  { %3296 = vmatmul.mubr.msk.f32.vlgmr.msra.gmra.mrb[92].mxu1 %vm68_vm1, %v2724_v35 }
0x1157   :  { %v3297_v23 = vpop.f32.mrb[92].mxu1 }
0x1158   :  { %2826 = vst [vmem:[%s4094_s13 + $0x8] sm:$0xff] %v3297_v23  ;;  %v2816_v15 = vpop.f32.mrb[93].mxu1 }
0x1159   :  { %2825 = vst [vmem:[%s4094_s13] sm:$0xff] %v2816_v15 }

</bundles_post_ra>
